<compile_context>
chip_gen: v5e
topology: v5e:2x2
jax: 0.10.0
libtpu: 0.0.40
codegen_flags: <defaults>
</compile_context>

<pallas_src>
import math
from functools import partial

import jax
import jax.numpy as jnp
from jax.experimental import pallas as pl
from jax.experimental.pallas import tpu as pltpu

VMEM_LIMIT = 48 * 1024 * 1024  # scoped-VMEM cap (leaves headroom on v7x's 64 MiB)


# ----------------------------- helpers -----------------------------

def _round_up(x, m):
    return ((x + m - 1) // m) * m


def _pad2(a, rows, cols):
    r, c = a.shape
    if r == rows and c == cols:
        return a
    return jnp.pad(a, ((0, rows - r), (0, cols - c)))


def _gelu(y):
    # exact erf GELU (PyTorch nn.GELU default); y is f32
    return 0.5 * y * (1.0 + jax.lax.erf(y * jnp.float32(1.0 / math.sqrt(2.0))))


def _pick_tile(dim, t_max, align):
    """Choose (tile, padded_dim) for one tiled axis.

    Single full-extent block when dim <= t_max (always layout-legal);
    otherwise prefer near-zero padding with the fewest grid steps
    (e.g. K=768 -> 384 not 512, K=3072 -> 512, M=1576 -> 400)."""
    if dim <= t_max:
        return dim, dim
    cands = []
    t = align
    while t <= t_max:
        padded = _round_up(dim, t)
        cands.append((padded // t, padded, t))
        t += align
    min_steps = min(c[0] for c in cands)
    cands = [c for c in cands if c[0] <= min_steps + 1]
    _, padded, tile = min(cands, key=lambda c: (c[1], c[0], -c[2]))
    return tile, padded


# ----------------------------- tiled linear (bias + optional activation) -----------------------------

def _linear_kernel(x_ref, w_ref, b_ref, o_ref, acc_ref, *, act, nk):
    @pl.when(pl.program_id(2) == 0)
    def _():
        acc_ref[...] = jnp.zeros_like(acc_ref)

    acc_ref[...] += jnp.dot(x_ref[...], w_ref[...],
                            preferred_element_type=jnp.float32)

    @pl.when(pl.program_id(2) == nk - 1)
    def _():
        y = acc_ref[...] + b_ref[...]            # bias is f32
        if act == "relu":
            y = jnp.maximum(y, 0.0)
        elif act == "gelu":
            y = _gelu(y)
        o_ref[...] = y.astype(o_ref.dtype)


def pallas_linear(x, w, b, act=None, tm_max=512, tn_max=256, tk_max=512):
    """y = act(x @ w + b); bf16 MXU operands, f32 accumulation / epilogue."""
    M, K = x.shape
    N = w.shape[1]

    tm, Mp = _pick_tile(M, tm_max, 8)
    tk, Kp = _pick_tile(K, tk_max, 128)
    if N < 128:                       # lane-dense store for narrow outputs (e.g. classifier)
        tn, Np = 128, 128
    else:
        tn, Np = _pick_tile(N, tn_max, 128)
    nk = Kp // tk

    xp = _pad2(x, Mp, Kp)
    wp = _pad2(w, Kp, Np)
    bp = _pad2(b.reshape(1, N).astype(jnp.float32), 1, Np)

    out = pl.pallas_call(
        partial(_linear_kernel, act=act, nk=nk),
        out_shape=jax.ShapeDtypeStruct((Mp, Np), x.dtype),
        grid=(Mp // tm, Np // tn, nk),
        in_specs=[
            pl.BlockSpec((tm, tk), lambda i, j, k: (i, k)),
            pl.BlockSpec((tk, tn), lambda i, j, k: (k, j)),
            pl.BlockSpec((1, tn), lambda i, j, k: (0, j)),
        ],
        out_specs=pl.BlockSpec((tm, tn), lambda i, j, k: (i, j)),
        scratch_shapes=[pltpu.VMEM((tm, tn), jnp.float32)],
        compiler_params=pltpu.CompilerParams(
            dimension_semantics=("parallel", "parallel", "arbitrary"),
            vmem_limit_bytes=VMEM_LIMIT),
    )(xp, wp, bp)

    if (Mp, Np) != (M, N):
        out = out[:M, :N]
    return out


# ----------------------------- fused linear + residual + LayerNorm -----------------------------

def _linear_res_ln_kernel(x_ref, w_ref, b_ref, r_ref, g_ref, bt_ref,
                          o_ref, acc_ref, *, nk, eps):
    @pl.when(pl.program_id(1) == 0)
    def _():
        acc_ref[...] = jnp.zeros_like(acc_ref)

    acc_ref[...] += jnp.dot(x_ref[...], w_ref[...],
                            preferred_element_type=jnp.float32)

    @pl.when(pl.program_id(1) == nk - 1)
    def _():
        y = acc_ref[...] + b_ref[...] + r_ref[...].astype(jnp.float32)
        mu = jnp.mean(y, axis=-1, keepdims=True)
        var = jnp.mean(jnp.square(y - mu), axis=-1, keepdims=True)
        y = (y - mu) * jax.lax.rsqrt(var + eps) * g_ref[...] + bt_ref[...]
        o_ref[...] = y.astype(o_ref.dtype)


def pallas_linear_res_ln(x, w, b, res, gamma, beta, tm_max=512, tk_max=512):
    """y = LayerNorm(x @ w + b + res); output rows span full D so LN stats are exact."""
    M, K = x.shape
    N = w.shape[1]                    # == model dim D, never padded
    tm, Mp = _pick_tile(M, tm_max, 8)
    tk, Kp = _pick_tile(K, tk_max, 128)
    nk = Kp // tk

    out = pl.pallas_call(
        partial(_linear_res_ln_kernel, nk=nk, eps=1e-5),
        out_shape=jax.ShapeDtypeStruct((Mp, N), x.dtype),
        grid=(Mp // tm, nk),
        in_specs=[
            pl.BlockSpec((tm, tk), lambda i, k: (i, k)),
            pl.BlockSpec((tk, N), lambda i, k: (k, 0)),
            pl.BlockSpec((1, N), lambda i, k: (0, 0)),
            pl.BlockSpec((tm, N), lambda i, k: (i, 0)),
            pl.BlockSpec((1, N), lambda i, k: (0, 0)),
            pl.BlockSpec((1, N), lambda i, k: (0, 0)),
        ],
        out_specs=pl.BlockSpec((tm, N), lambda i, k: (i, 0)),
        scratch_shapes=[pltpu.VMEM((tm, N), jnp.float32)],
        compiler_params=pltpu.CompilerParams(
            dimension_semantics=("parallel", "arbitrary"),
            vmem_limit_bytes=VMEM_LIMIT),
    )(_pad2(x, Mp, Kp), _pad2(w, Kp, N),
      b.reshape(1, N).astype(jnp.float32), _pad2(res, Mp, N),
      gamma.reshape(1, N), beta.reshape(1, N))
    return out[:M] if Mp != M else out


# ----------------------------- fused FFN (W1+ReLU+W2) + residual + LayerNorm -----------------------------
# W1 / W2 are fully VMEM-resident (constant index_map over the M grid): FFN
# weights are DMA'd once per call instead of once per M tile, and the (M, 4D)
# hidden activation never reaches HBM.

def _ffn_res_ln_kernel(x_ref, w1_ref, b1_ref, w2_ref, b2_ref, g_ref, bt_ref,
                       o_ref, acc_ref, *, chunks, eps):
    x = x_ref[...]                                   # (tm, D) bf16
    acc_ref[...] = jnp.zeros_like(acc_ref)
    for lo, hi in chunks:                            # static hidden-dim chunks, unrolled
        hid = jnp.dot(x, w1_ref[:, lo:hi],
                      preferred_element_type=jnp.float32) + b1_ref[:, lo:hi]
        hid = jnp.maximum(hid, 0.0)                  # ReLU (TransformerEncoderLayer default)
        acc_ref[...] += jnp.dot(hid.astype(jnp.bfloat16), w2_ref[lo:hi, :],
                                preferred_element_type=jnp.float32)
    y = acc_ref[...] + b2_ref[...] + x.astype(jnp.float32)   # residual = x
    mu = jnp.mean(y, axis=-1, keepdims=True)
    var = jnp.mean(jnp.square(y - mu), axis=-1, keepdims=True)
    y = (y - mu) * jax.lax.rsqrt(var + eps) * g_ref[...] + bt_ref[...]
    o_ref[...] = y.astype(o_ref.dtype)


def pallas_ffn_res_ln(x, w1, b1, w2, b2, gamma, beta, tm_max=512, th_max=512):
    M, D = x.shape
    Hh = w1.shape[1]
    tm, Mp = _pick_tile(M, tm_max, 8)
    th = min(th_max, Hh)
    chunks = tuple((lo, min(lo + th, Hh)) for lo in range(0, Hh, th))

    out = pl.pallas_call(
        partial(_ffn_res_ln_kernel, chunks=chunks, eps=1e-5),
        out_shape=jax.ShapeDtypeStruct((Mp, D), x.dtype),
        grid=(Mp // tm,),
        in_specs=[
            pl.BlockSpec((tm, D), lambda i: (i, 0)),
            pl.BlockSpec((D, Hh), lambda i: (0, 0)),   # resident across the grid
            pl.BlockSpec((1, Hh), lambda i: (0, 0)),
            pl.BlockSpec((Hh, D), lambda i: (0, 0)),   # resident across the grid
            pl.BlockSpec((1, D), lambda i: (0, 0)),
            pl.BlockSpec((1, D), lambda i: (0, 0)),
            pl.BlockSpec((1, D), lambda i: (0, 0)),
        ],
        out_specs=pl.BlockSpec((tm, D), lambda i: (i, 0)),
        scratch_shapes=[pltpu.VMEM((tm, D), jnp.float32)],
        compiler_params=pltpu.CompilerParams(
            dimension_semantics=("parallel",),
            vmem_limit_bytes=VMEM_LIMIT),
    )(_pad2(x, Mp, D), w1, b1.reshape(1, Hh).astype(jnp.float32), w2,
      b2.reshape(1, D).astype(jnp.float32),
      gamma.reshape(1, D), beta.reshape(1, D))
    return out[:M] if Mp != M else out


# ----------------------------- multi-head attention -----------------------------
# One grid step per batch element; reads the fused (T, 3D) qkv slab directly
# (no XLA transposes) and writes the (T, D) output lane-dense in head groups
# whose combined width is a multiple of 128 (or the full D when D <= 128).
# Q is pre-scaled by 1/sqrt(dh) (folded into the in_proj weights).

def _head_group(num_heads, dh):
    D = num_heads * dh
    if D <= 128:
        return num_heads
    for hg in range(1, num_heads + 1):
        if num_heads % hg == 0 and (hg * dh) % 128 == 0:
            return hg
    return num_heads


def _mha_kernel(qkv_ref, o_ref, *, num_heads, dh, hg):
    # TODO(synk): for large T (ViT-L / high-res) switch to flash-style KV tiling
    # so the (T, T) score block stays bounded on v7x's 64 MiB VMEM.
    D = num_heads * dh
    for g in range(num_heads // hg):
        outs = []
        for hh in range(hg):
            h = g * hg + hh
            q = qkv_ref[0, :, h * dh:(h + 1) * dh]                 # (T, dh), pre-scaled
            k = qkv_ref[0, :, D + h * dh:D + (h + 1) * dh]
            v = qkv_ref[0, :, 2 * D + h * dh:2 * D + (h + 1) * dh]
            s = jnp.einsum('qd,kd->qk', q, k,
                           preferred_element_type=jnp.float32)     # (T, T) f32
            m = jnp.max(s, axis=-1, keepdims=True)
            p = jnp.exp(s - m)
            denom = jnp.sum(p, axis=-1, keepdims=True)
            o = jnp.dot(p.astype(jnp.bfloat16), v,
                        preferred_element_type=jnp.float32)
            outs.append(o * pl.reciprocal(denom, approx=True))     # EUP reciprocal
        og = outs[0] if hg == 1 else jnp.concatenate(outs, axis=-1)
        o_ref[0, :, g * hg * dh:(g + 1) * hg * dh] = og.astype(o_ref.dtype)


def pallas_attention(qkv, num_heads):
    """qkv: (B, T, 3D) with columns [Q | K | V]; returns (B, T, D)."""
    B, T, threeD = qkv.shape
    D = threeD // 3
    dh = D // num_heads
    hg = _head_group(num_heads, dh)
    return pl.pallas_call(
        partial(_mha_kernel, num_heads=num_heads, dh=dh, hg=hg),
        out_shape=jax.ShapeDtypeStruct((B, T, D), qkv.dtype),
        grid=(B,),
        in_specs=[pl.BlockSpec((1, T, threeD), lambda b: (b, 0, 0))],
        out_specs=pl.BlockSpec((1, T, D), lambda b: (b, 0, 0)),
        compiler_params=pltpu.CompilerParams(
            dimension_semantics=("parallel",),
            vmem_limit_bytes=VMEM_LIMIT),
    )(qkv)


# ----------------------------- positional embedding / parameters -----------------------------

def sincos_pe_2d(h, w, D, dtype=jnp.float32):
    # TODO(synk): SinusodialEmbedding class not provided in source; using a
    # standard 2D sin/cos positional embedding (half channels row, half column).
    d_half = D // 2

    def pe_1d(n, d):
        pos = jnp.arange(n, dtype=jnp.float32)[:, None]
        n_sin = (d + 1) // 2
        div = jnp.exp(-math.log(10000.0) *
                      (2.0 * jnp.arange(n_sin, dtype=jnp.float32)) / d)
        ang = pos * div[None, :]
        pe = jnp.zeros((n, d), jnp.float32)
        pe = pe.at[:, 0::2].set(jnp.sin(ang))
        pe = pe.at[:, 1::2].set(jnp.cos(ang[:, : d // 2]))
        return pe

    pe_h = pe_1d(h, d_half)
    pe_w = pe_1d(w, D - d_half)
    pe = jnp.concatenate(
        [jnp.broadcast_to(pe_h[:, None, :], (h, w, d_half)),
         jnp.broadcast_to(pe_w[None, :, :], (h, w, D - d_half))],
        axis=-1)
    return pe.reshape(h * w, D).astype(dtype)


def init_params(key, *, C, patch, D, layers, classes):
    keys = jax.random.split(key, 4 + layers)
    s = 0.02
    params = {
        "cls_tok": jax.random.normal(keys[0], (D,), jnp.float32),
        "patch_w": s * jax.random.normal(keys[1], (C * patch * patch, D), jnp.float32),
        "patch_b": jnp.zeros((D,), jnp.float32),
        "head_w1": s * jax.random.normal(keys[2], (D, 4 * D), jnp.float32),
        "head_b1": jnp.zeros((4 * D,), jnp.float32),
        "head_w2": s * jax.random.normal(keys[3], (4 * D, classes), jnp.float32),
        "head_b2": jnp.zeros((classes,), jnp.float32),
        "layers": [],
    }
    for l in range(layers):
        lk = jax.random.split(keys[4 + l], 4)
        params["layers"].append({
            "in_proj_w": s * jax.random.normal(lk[0], (D, 3 * D), jnp.float32),
            "in_proj_b": jnp.zeros((3 * D,), jnp.float32),
            "out_proj_w": s * jax.random.normal(lk[1], (D, D), jnp.float32),
            "out_proj_b": jnp.zeros((D,), jnp.float32),
            "ffn_w1": s * jax.random.normal(lk[2], (D, 4 * D), jnp.float32),
            "ffn_b1": jnp.zeros((4 * D,), jnp.float32),
            "ffn_w2": s * jax.random.normal(lk[3], (4 * D, D), jnp.float32),
            "ffn_b2": jnp.zeros((D,), jnp.float32),
            "ln1_g": jnp.ones((D,), jnp.float32),
            "ln1_b": jnp.zeros((D,), jnp.float32),
            "ln2_g": jnp.ones((D,), jnp.float32),
            "ln2_b": jnp.zeros((D,), jnp.float32),
        })
    return params


def prepare_params(params, num_heads):
    """One-time inference prep: weights -> bf16, fold 1/sqrt(dh) into Q projection.
    Biases / LayerNorm params stay f32 (added in the f32 epilogues)."""
    D = params["cls_tok"].shape[0]
    dh = D // num_heads
    scale = jnp.float32(1.0 / math.sqrt(dh))

    def w(a):
        return jnp.asarray(a, jnp.bfloat16)

    out = {
        "cls_tok": params["cls_tok"],
        "patch_w": w(params["patch_w"]), "patch_b": params["patch_b"],
        "head_w1": w(params["head_w1"]), "head_b1": params["head_b1"],
        "head_w2": w(params["head_w2"]), "head_b2": params["head_b2"],
        "layers": [],
    }
    for L in params["layers"]:
        ipw = L["in_proj_w"].at[:, :D].multiply(scale)
        ipb = L["in_proj_b"].at[:D].multiply(scale)
        out["layers"].append({
            "in_proj_w": w(ipw), "in_proj_b": ipb,
            "out_proj_w": w(L["out_proj_w"]), "out_proj_b": L["out_proj_b"],
            "ffn_w1": w(L["ffn_w1"]), "ffn_b1": L["ffn_b1"],
            "ffn_w2": w(L["ffn_w2"]), "ffn_b2": L["ffn_b2"],
            "ln1_g": L["ln1_g"], "ln1_b": L["ln1_b"],
            "ln2_g": L["ln2_g"], "ln2_b": L["ln2_b"],
        })
    return out


# ----------------------------- forward -----------------------------

def vit_forward(params, x, *, patch_size, num_heads):
    B, C, Himg, Wimg = x.shape
    p = patch_size
    assert Himg % p == 0 and Wimg % p == 0
    h, w = Himg // p, Wimg // p
    D = params["cls_tok"].shape[0]

    # 'b d (h i) (w j) -> b (h w) (d i j)' — patchify, channel ordering (d,i,j)
    xp = (x.reshape(B, C, h, p, w, p)
            .transpose(0, 2, 4, 1, 3, 5)
            .reshape(B * h * w, C * p * p)
            .astype(jnp.bfloat16))

    # patch embedding (1x1 conv == linear), then 2D sin/cos PE added as a tiny
    # epilogue on (B, h*w, D) (no B-times-tiled PE materialization).
    z = pallas_linear(xp, params["patch_w"], params["patch_b"])      # (B*hw, D) bf16
    pe = sincos_pe_2d(h, w, D, jnp.float32)
    z = z.reshape(B, h * w, D) + pe[None].astype(z.dtype)

    # prepend cls token; batch-first tokens (identical math to seq-first layout)
    cls = jnp.broadcast_to(params["cls_tok"].astype(z.dtype)[None, None, :], (B, 1, D))
    tokens = jnp.concatenate([cls, z], axis=1)                       # (B, T, D)
    T = tokens.shape[1]
    xf = tokens.reshape(B * T, D)

    for layer in params["layers"]:
        # ---- multi-head self-attention (post-norm; dropout = identity) ----
        qkv = pallas_linear(xf, layer["in_proj_w"], layer["in_proj_b"])   # (B*T, 3D)
        attn = pallas_attention(qkv.reshape(B, T, 3 * D), num_heads)      # (B, T, D)
        # out-proj + residual + LayerNorm fused in one kernel
        xf = pallas_linear_res_ln(attn.reshape(B * T, D),
                                  layer["out_proj_w"], layer["out_proj_b"],
                                  xf, layer["ln1_g"], layer["ln1_b"])
        # ---- feed-forward + residual + LayerNorm fused in one kernel ----
        xf = pallas_ffn_res_ln(xf, layer["ffn_w1"], layer["ffn_b1"],
                               layer["ffn_w2"], layer["ffn_b2"],
                               layer["ln2_g"], layer["ln2_b"])

    cls_out = xf.reshape(B, T, D)[:, 0, :]                           # (B, D)

    # classification head: Linear -> GELU -> Linear (narrow outputs padded to
    # 128 lanes inside the kernel and sliced back in the wrapper)
    hmid = pallas_linear(cls_out, params["head_w1"], params["head_b1"], act="gelu")
    logits = pallas_linear(hmid, params["head_w2"], params["head_b2"])
    return logits.astype(jnp.float32)


# ----------------------------- demo -----------------------------

if __name__ == "__main__":
    B, C, IMG = 2, 3, 16
    PATCH, D, HEADS, LAYERS, CLASSES = 4, 32, 4, 2, 10

    key = jax.random.PRNGKey(0)
    pkey, xkey = jax.random.split(key)
    params = init_params(pkey, C=C, patch=PATCH, D=D, layers=LAYERS, classes=CLASSES)
    params = prepare_params(params, num_heads=HEADS)
    x = jax.random.normal(xkey, (B, C, IMG, IMG), jnp.float32)

    fwd = jax.jit(partial(vit_forward, patch_size=PATCH, num_heads=HEADS))
    logits = fwd(params, x)
    jax.block_until_ready(logits)
    assert logits.shape == (B, CLASSES)
    assert bool(jnp.all(jnp.isfinite(logits)))
    print("KERNEL_OK")
</pallas_src>

<mosaic_0001>
module attributes {stable_mosaic.version = 11 : i64} {
  func.func @_linear_kernel(%arg0: i32, %arg1: i32, %arg2: i32, %arg3: memref<32x48xbf16, #tpu.memory_space<vmem>>, %arg4: memref<48x128xbf16, #tpu.memory_space<vmem>>, %arg5: memref<1x128xf32, #tpu.memory_space<vmem>>, %arg6: memref<32x128xbf16, #tpu.memory_space<vmem>>, %arg7: memref<32x128xf32, #tpu.memory_space<vmem>>) attributes {dimension_semantics = [#tpu.dimension_semantics<parallel>, #tpu.dimension_semantics<parallel>, #tpu.dimension_semantics<arbitrary>], iteration_bounds = array<i64: 1, 1, 1>, scalar_prefetch = 0 : i64, scratch_operands = 1 : i64, tpu.core_type = #tpu.core_type<tc>, window_params = [{transform_indices = @transform_0, window_bounds = array<i64: 32, 48>}, {transform_indices = @transform_1, window_bounds = array<i64: 48, 128>}, {transform_indices = @transform_2, window_bounds = array<i64: 1, 128>}, {transform_indices = @transform_3, window_bounds = array<i64: 32, 128>}]} {
    %c0_i32 = arith.constant 0 : i32
    %0 = arith.cmpi eq, %arg2, %c0_i32 : i32
    %1 = arith.extui %0 : i1 to i32
    %c0_i32_0 = arith.constant 0 : i32
    %2 = arith.cmpi ne, %1, %c0_i32_0 : i32
    scf.if %2 {
      %cst_10 = arith.constant 0.000000e+00 : f32
      %12 = vector.broadcast %cst_10 : f32 to vector<32x128xf32>
      %c0_11 = arith.constant 0 : index
      %c0_12 = arith.constant 0 : index
      %13 = vector.load %arg7[%c0_11, %c0_12] : memref<32x128xf32, #tpu.memory_space<vmem>>, vector<32x128xf32>
      tpu.vector_store %arg7[%c0_11, %c0_12], %12 {strides = array<i32>} : memref<32x128xf32, #tpu.memory_space<vmem>>, vector<32x128xf32>,
    } else {
    }
    %c0 = arith.constant 0 : index
    %c0_1 = arith.constant 0 : index
    %3 = vector.load %arg7[%c0, %c0_1] : memref<32x128xf32, #tpu.memory_space<vmem>>, vector<32x128xf32>
    %c0_2 = arith.constant 0 : index
    %c0_3 = arith.constant 0 : index
    %4 = vector.load %arg3[%c0_2, %c0_3] : memref<32x48xbf16, #tpu.memory_space<vmem>>, vector<32x48xbf16>
    %c0_4 = arith.constant 0 : index
    %c0_5 = arith.constant 0 : index
    %5 = vector.load %arg4[%c0_4, %c0_5] : memref<48x128xbf16, #tpu.memory_space<vmem>>, vector<48x128xbf16>
    %cst = arith.constant dense<0.000000e+00> : vector<32x128xf32>
    %6 = tpu.matmul %4, %5, %cst {dimension_numbers = #tpu.dot_dimension_numbers<[1], [0], [0], [1], [0, 0, 1, 1], [], []>} : vector<32x48xbf16>, vector<48x128xbf16>, vector<32x128xf32> -> vector<32x128xf32>
    %7 = arith.addf %3, %6 : vector<32x128xf32>
    %c0_6 = arith.constant 0 : index
    %c0_7 = arith.constant 0 : index
    %8 = vector.load %arg7[%c0_6, %c0_7] : memref<32x128xf32, #tpu.memory_space<vmem>>, vector<32x128xf32>
    tpu.vector_store %arg7[%c0_6, %c0_7], %7 {strides = array<i32>} : memref<32x128xf32, #tpu.memory_space<vmem>>, vector<32x128xf32>,
    %c0_i32_8 = arith.constant 0 : i32
    %9 = arith.cmpi eq, %arg2, %c0_i32_8 : i32
    %10 = arith.extui %9 : i1 to i32
    %c0_i32_9 = arith.constant 0 : i32
    %11 = arith.cmpi ne, %10, %c0_i32_9 : i32
    scf.if %11 {
      %c0_10 = arith.constant 0 : index
      %c0_11 = arith.constant 0 : index
      %12 = vector.load %arg7[%c0_10, %c0_11] : memref<32x128xf32, #tpu.memory_space<vmem>>, vector<32x128xf32>
      %c0_12 = arith.constant 0 : index
      %c0_13 = arith.constant 0 : index
      %13 = vector.load %arg5[%c0_12, %c0_13] : memref<1x128xf32, #tpu.memory_space<vmem>>, vector<1x128xf32>
      %14 = vector.broadcast %13 : vector<1x128xf32> to vector<32x128xf32>
      %15 = arith.addf %12, %14 : vector<32x128xf32>
      %16 = arith.truncf %15 : vector<32x128xf32> to vector<32x128xbf16>
      %c0_14 = arith.constant 0 : index
      %c0_15 = arith.constant 0 : index
      %17 = vector.load %arg6[%c0_14, %c0_15] : memref<32x128xbf16, #tpu.memory_space<vmem>>, vector<32x128xbf16>
      tpu.vector_store %arg6[%c0_14, %c0_15], %16 {strides = array<i32>} : memref<32x128xbf16, #tpu.memory_space<vmem>>, vector<32x128xbf16>,
    } else {
    }
    return
  }
  func.func @transform_0(%arg0: i32, %arg1: i32, %arg2: i32) -> (i32, i32) {
    %c0_i32 = arith.constant 0 : i32
    return %arg0, %arg2 : i32, i32
  }
  func.func @transform_1(%arg0: i32, %arg1: i32, %arg2: i32) -> (i32, i32) {
    %c0_i32 = arith.constant 0 : i32
    return %arg2, %arg1 : i32, i32
  }
  func.func @transform_2(%arg0: i32, %arg1: i32, %arg2: i32) -> (i32, i32) {
    %c0_i32 = arith.constant 0 : i32
    %c0_i32_0 = arith.constant 0 : i32
    return %c0_i32, %arg1 : i32, i32
  }
  func.func @transform_3(%arg0: i32, %arg1: i32, %arg2: i32) -> (i32, i32) {
    %c0_i32 = arith.constant 0 : i32
    return %arg0, %arg1 : i32, i32
  }
}

module attributes {stable_mosaic.version = 11 : i64} {
  func.func @_linear_kernel(%arg0: i32, %arg1: i32, %arg2: i32, %arg3: memref<34x32xbf16, #tpu.memory_space<vmem>>, %arg4: memref<32x128xbf16, #tpu.memory_space<vmem>>, %arg5: memref<1x128xf32, #tpu.memory_space<vmem>>, %arg6: memref<34x128xbf16, #tpu.memory_space<vmem>>, %arg7: memref<34x128xf32, #tpu.memory_space<vmem>>) attributes {dimension_semantics = [#tpu.dimension_semantics<parallel>, #tpu.dimension_semantics<parallel>, #tpu.dimension_semantics<arbitrary>], iteration_bounds = array<i64: 1, 1, 1>, scalar_prefetch = 0 : i64, scratch_operands = 1 : i64, tpu.core_type = #tpu.core_type<tc>, window_params = [{transform_indices = @transform_0, window_bounds = array<i64: 34, 32>}, {transform_indices = @transform_1, window_bounds = array<i64: 32, 128>}, {transform_indices = @transform_2, window_bounds = array<i64: 1, 128>}, {transform_indices = @transform_3, window_bounds = array<i64: 34, 128>}]} {
    %c0_i32 = arith.constant 0 : i32
    %0 = arith.cmpi eq, %arg2, %c0_i32 : i32
    %1 = arith.extui %0 : i1 to i32
    %c0_i32_0 = arith.constant 0 : i32
    %2 = arith.cmpi ne, %1, %c0_i32_0 : i32
    scf.if %2 {
      %cst_10 = arith.constant 0.000000e+00 : f32
      %12 = vector.broadcast %cst_10 : f32 to vector<34x128xf32>
      %c0_11 = arith.constant 0 : index
      %c0_12 = arith.constant 0 : index
      %13 = vector.load %arg7[%c0_11, %c0_12] : memref<34x128xf32, #tpu.memory_space<vmem>>, vector<34x128xf32>
      tpu.vector_store %arg7[%c0_11, %c0_12], %12 {strides = array<i32>} : memref<34x128xf32, #tpu.memory_space<vmem>>, vector<34x128xf32>,
    } else {
    }
    %c0 = arith.constant 0 : index
    %c0_1 = arith.constant 0 : index
    %3 = vector.load %arg7[%c0, %c0_1] : memref<34x128xf32, #tpu.memory_space<vmem>>, vector<34x128xf32>
    %c0_2 = arith.constant 0 : index
    %c0_3 = arith.constant 0 : index
    %4 = vector.load %arg3[%c0_2, %c0_3] : memref<34x32xbf16, #tpu.memory_space<vmem>>, vector<34x32xbf16>
    %c0_4 = arith.constant 0 : index
    %c0_5 = arith.constant 0 : index
    %5 = vector.load %arg4[%c0_4, %c0_5] : memref<32x128xbf16, #tpu.memory_space<vmem>>, vector<32x128xbf16>
    %cst = arith.constant dense<0.000000e+00> : vector<34x128xf32>
    %6 = tpu.matmul %4, %5, %cst {dimension_numbers = #tpu.dot_dimension_numbers<[1], [0], [0], [1], [0, 0, 1, 1], [], []>} : vector<34x32xbf16>, vector<32x128xbf16>, vector<34x128xf32> -> vector<34x128xf32>
    %7 = arith.addf %3, %6 : vector<34x128xf32>
    %c0_6 = arith.constant 0 : index
    %c0_7 = arith.constant 0 : index
    %8 = vector.load %arg7[%c0_6, %c0_7] : memref<34x128xf32, #tpu.memory_space<vmem>>, vector<34x128xf32>
    tpu.vector_store %arg7[%c0_6, %c0_7], %7 {strides = array<i32>} : memref<34x128xf32, #tpu.memory_space<vmem>>, vector<34x128xf32>,
    %c0_i32_8 = arith.constant 0 : i32
    %9 = arith.cmpi eq, %arg2, %c0_i32_8 : i32
    %10 = arith.extui %9 : i1 to i32
    %c0_i32_9 = arith.constant 0 : i32
    %11 = arith.cmpi ne, %10, %c0_i32_9 : i32
    scf.if %11 {
      %c0_10 = arith.constant 0 : index
      %c0_11 = arith.constant 0 : index
      %12 = vector.load %arg7[%c0_10, %c0_11] : memref<34x128xf32, #tpu.memory_space<vmem>>, vector<34x128xf32>
      %c0_12 = arith.constant 0 : index
      %c0_13 = arith.constant 0 : index
      %13 = vector.load %arg5[%c0_12, %c0_13] : memref<1x128xf32, #tpu.memory_space<vmem>>, vector<1x128xf32>
      %14 = vector.broadcast %13 : vector<1x128xf32> to vector<34x128xf32>
      %15 = arith.addf %12, %14 : vector<34x128xf32>
      %16 = arith.truncf %15 : vector<34x128xf32> to vector<34x128xbf16>
      %c0_14 = arith.constant 0 : index
      %c0_15 = arith.constant 0 : index
      %17 = vector.load %arg6[%c0_14, %c0_15] : memref<34x128xbf16, #tpu.memory_space<vmem>>, vector<34x128xbf16>
      tpu.vector_store %arg6[%c0_14, %c0_15], %16 {strides = array<i32>} : memref<34x128xbf16, #tpu.memory_space<vmem>>, vector<34x128xbf16>,
    } else {
    }
    return
  }
  func.func @transform_0(%arg0: i32, %arg1: i32, %arg2: i32) -> (i32, i32) {
    %c0_i32 = arith.constant 0 : i32
    return %arg0, %arg2 : i32, i32
  }
  func.func @transform_1(%arg0: i32, %arg1: i32, %arg2: i32) -> (i32, i32) {
    %c0_i32 = arith.constant 0 : i32
    return %arg2, %arg1 : i32, i32
  }
  func.func @transform_2(%arg0: i32, %arg1: i32, %arg2: i32) -> (i32, i32) {
    %c0_i32 = arith.constant 0 : i32
    %c0_i32_0 = arith.constant 0 : i32
    return %c0_i32, %arg1 : i32, i32
  }
  func.func @transform_3(%arg0: i32, %arg1: i32, %arg2: i32) -> (i32, i32) {
    %c0_i32 = arith.constant 0 : i32
    return %arg0, %arg1 : i32, i32
  }
}

module attributes {stable_mosaic.version = 11 : i64} {
  func.func @_linear_res_ln_kernel(%arg0: i32, %arg1: i32, %arg2: memref<34x32xbf16, #tpu.memory_space<vmem>>, %arg3: memref<32x32xbf16, #tpu.memory_space<vmem>>, %arg4: memref<1x32xf32, #tpu.memory_space<vmem>>, %arg5: memref<34x32xbf16, #tpu.memory_space<vmem>>, %arg6: memref<1x32xf32, #tpu.memory_space<vmem>>, %arg7: memref<1x32xf32, #tpu.memory_space<vmem>>, %arg8: memref<34x32xbf16, #tpu.memory_space<vmem>>, %arg9: memref<34x32xf32, #tpu.memory_space<vmem>>) attributes {dimension_semantics = [#tpu.dimension_semantics<parallel>, #tpu.dimension_semantics<arbitrary>], iteration_bounds = array<i64: 1, 1>, scalar_prefetch = 0 : i64, scratch_operands = 1 : i64, tpu.core_type = #tpu.core_type<tc>, window_params = [{transform_indices = @transform_0, window_bounds = array<i64: 34, 32>}, {transform_indices = @transform_1, window_bounds = array<i64: 32, 32>}, {pipeline_mode = #tpu.pipeline_mode<synchronous>, transform_indices = @transform_2, window_bounds = array<i64: 1, 32>}, {transform_indices = @transform_3, window_bounds = array<i64: 34, 32>}, {pipeline_mode = #tpu.pipeline_mode<synchronous>, transform_indices = @transform_4, window_bounds = array<i64: 1, 32>}, {pipeline_mode = #tpu.pipeline_mode<synchronous>, transform_indices = @transform_5, window_bounds = array<i64: 1, 32>}, {transform_indices = @transform_6, window_bounds = array<i64: 34, 32>}]} {
    %c0_i32 = arith.constant 0 : i32
    %0 = arith.cmpi eq, %arg1, %c0_i32 : i32
    %1 = arith.extui %0 : i1 to i32
    %c0_i32_0 = arith.constant 0 : i32
    %2 = arith.cmpi ne, %1, %c0_i32_0 : i32
    scf.if %2 {
      %cst_10 = arith.constant 0.000000e+00 : f32
      %12 = vector.broadcast %cst_10 : f32 to vector<34x32xf32>
      %c0_11 = arith.constant 0 : index
      %c0_12 = arith.constant 0 : index
      %13 = vector.load %arg9[%c0_11, %c0_12] : memref<34x32xf32, #tpu.memory_space<vmem>>, vector<34x32xf32>
      tpu.vector_store %arg9[%c0_11, %c0_12], %12 {strides = array<i32>} : memref<34x32xf32, #tpu.memory_space<vmem>>, vector<34x32xf32>,
    } else {
    }
    %c0 = arith.constant 0 : index
    %c0_1 = arith.constant 0 : index
    %3 = vector.load %arg9[%c0, %c0_1] : memref<34x32xf32, #tpu.memory_space<vmem>>, vector<34x32xf32>
    %c0_2 = arith.constant 0 : index
    %c0_3 = arith.constant 0 : index
    %4 = vector.load %arg2[%c0_2, %c0_3] : memref<34x32xbf16, #tpu.memory_space<vmem>>, vector<34x32xbf16>
    %c0_4 = arith.constant 0 : index
    %c0_5 = arith.constant 0 : index
    %5 = vector.load %arg3[%c0_4, %c0_5] : memref<32x32xbf16, #tpu.memory_space<vmem>>, vector<32x32xbf16>
    %cst = arith.constant dense<0.000000e+00> : vector<34x32xf32>
    %6 = tpu.matmul %4, %5, %cst {dimension_numbers = #tpu.dot_dimension_numbers<[1], [0], [0], [1], [0, 0, 1, 1], [], []>} : vector<34x32xbf16>, vector<32x32xbf16>, vector<34x32xf32> -> vector<34x32xf32>
    %7 = arith.addf %3, %6 : vector<34x32xf32>
    %c0_6 = arith.constant 0 : index
    %c0_7 = arith.constant 0 : index
    %8 = vector.load %arg9[%c0_6, %c0_7] : memref<34x32xf32, #tpu.memory_space<vmem>>, vector<34x32xf32>
    tpu.vector_store %arg9[%c0_6, %c0_7], %7 {strides = array<i32>} : memref<34x32xf32, #tpu.memory_space<vmem>>, vector<34x32xf32>,
    %c0_i32_8 = arith.constant 0 : i32
    %9 = arith.cmpi eq, %arg1, %c0_i32_8 : i32
    %10 = arith.extui %9 : i1 to i32
    %c0_i32_9 = arith.constant 0 : i32
    %11 = arith.cmpi ne, %10, %c0_i32_9 : i32
    scf.if %11 {
      %c0_10 = arith.constant 0 : index
      %c0_11 = arith.constant 0 : index
      %12 = vector.load %arg9[%c0_10, %c0_11] : memref<34x32xf32, #tpu.memory_space<vmem>>, vector<34x32xf32>
      %c0_12 = arith.constant 0 : index
      %c0_13 = arith.constant 0 : index
      %13 = vector.load %arg4[%c0_12, %c0_13] : memref<1x32xf32, #tpu.memory_space<vmem>>, vector<1x32xf32>
      %14 = vector.broadcast %13 : vector<1x32xf32> to vector<34x32xf32>
      %15 = arith.addf %12, %14 : vector<34x32xf32>
      %c0_14 = arith.constant 0 : index
      %c0_15 = arith.constant 0 : index
      %16 = vector.load %arg5[%c0_14, %c0_15] : memref<34x32xbf16, #tpu.memory_space<vmem>>, vector<34x32xbf16>
      %17 = arith.extf %16 : vector<34x32xbf16> to vector<34x32xf32>
      %18 = arith.addf %15, %17 : vector<34x32xf32>
      %cst_16 = arith.constant dense<0.000000e+00> : vector<34xf32>
      %19 = vector.multi_reduction <add>, %18, %cst_16 [1] : vector<34x32xf32> to vector<34xf32>
      %20 = vector.shape_cast %19 : vector<34xf32> to vector<34x1xf32>
      %cst_17 = arith.constant 3.200000e+01 : f32
      %21 = vector.broadcast %cst_17 : f32 to vector<34x1xf32>
      %22 = arith.divf %20, %21 : vector<34x1xf32>
      %23 = vector.broadcast %22 : vector<34x1xf32> to vector<34x32xf32>
      %24 = arith.subf %18, %23 : vector<34x32xf32>
      %25 = arith.mulf %24, %24 : vector<34x32xf32>
      %cst_18 = arith.constant dense<0.000000e+00> : vector<34xf32>
      %26 = vector.multi_reduction <add>, %25, %cst_18 [1] : vector<34x32xf32> to vector<34xf32>
      %27 = vector.shape_cast %26 : vector<34xf32> to vector<34x1xf32>
      %cst_19 = arith.constant 3.200000e+01 : f32
      %28 = vector.broadcast %cst_19 : f32 to vector<34x1xf32>
      %29 = arith.divf %27, %28 : vector<34x1xf32>
      %30 = vector.broadcast %22 : vector<34x1xf32> to vector<34x32xf32>
      %31 = arith.subf %18, %30 : vector<34x32xf32>
      %cst_20 = arith.constant 9.99999974E-6 : f32
      %32 = vector.broadcast %cst_20 : f32 to vector<34x1xf32>
      %33 = arith.addf %29, %32 : vector<34x1xf32>
      %34 = math.rsqrt %33 : vector<34x1xf32>
      %35 = vector.broadcast %34 : vector<34x1xf32> to vector<34x32xf32>
      %36 = arith.mulf %31, %35 : vector<34x32xf32>
      %c0_21 = arith.constant 0 : index
      %c0_22 = arith.constant 0 : index
      %37 = vector.load %arg6[%c0_21, %c0_22] : memref<1x32xf32, #tpu.memory_space<vmem>>, vector<1x32xf32>
      %38 = vector.broadcast %37 : vector<1x32xf32> to vector<34x32xf32>
      %39 = arith.mulf %36, %38 : vector<34x32xf32>
      %c0_23 = arith.constant 0 : index
      %c0_24 = arith.constant 0 : index
      %40 = vector.load %arg7[%c0_23, %c0_24] : memref<1x32xf32, #tpu.memory_space<vmem>>, vector<1x32xf32>
      %41 = vector.broadcast %40 : vector<1x32xf32> to vector<34x32xf32>
      %42 = arith.addf %39, %41 : vector<34x32xf32>
      %43 = arith.truncf %42 : vector<34x32xf32> to vector<34x32xbf16>
      %c0_25 = arith.constant 0 : index
      %c0_26 = arith.constant 0 : index
      %44 = vector.load %arg8[%c0_25, %c0_26] : memref<34x32xbf16, #tpu.memory_space<vmem>>, vector<34x32xbf16>
      tpu.vector_store %arg8[%c0_25, %c0_26], %43 {strides = array<i32>} : memref<34x32xbf16, #tpu.memory_space<vmem>>, vector<34x32xbf16>,
    } else {
    }
    return
  }
  func.func @transform_0(%arg0: i32, %arg1: i32) -> (i32, i32) {
    %c0_i32 = arith.constant 0 : i32
    return %arg0, %arg1 : i32, i32
  }
  func.func @transform_1(%arg0: i32, %arg1: i32) -> (i32, i32) {
    %c0_i32 = arith.constant 0 : i32
    %c0_i32_0 = arith.constant 0 : i32
    return %arg1, %c0_i32 : i32, i32
  }
  func.func @transform_2(%arg0: i32, %arg1: i32) -> (i32, i32) {
    %c0_i32 = arith.constant 0 : i32
    %c0_i32_0 = arith.constant 0 : i32
    %c0_i32_1 = arith.constant 0 : i32
    return %c0_i32, %c0_i32_0 : i32, i32
  }
  func.func @transform_3(%arg0: i32, %arg1: i32) -> (i32, i32) {
    %c0_i32 = arith.constant 0 : i32
    %c0_i32_0 = arith.constant 0 : i32
    return %arg0, %c0_i32 : i32, i32
  }
  func.func @transform_4(%arg0: i32, %arg1: i32) -> (i32, i32) {
    %c0_i32 = arith.constant 0 : i32
    %c0_i32_0 = arith.constant 0 : i32
    %c0_i32_1 = arith.constant 0 : i32
    return %c0_i32, %c0_i32_0 : i32, i32
  }
  func.func @transform_5(%arg0: i32, %arg1: i32) -> (i32, i32) {
    %c0_i32 = arith.constant 0 : i32
    %c0_i32_0 = arith.constant 0 : i32
    %c0_i32_1 = arith.constant 0 : i32
    return %c0_i32, %c0_i32_0 : i32, i32
  }
  func.func @transform_6(%arg0: i32, %arg1: i32) -> (i32, i32) {
    %c0_i32 = arith.constant 0 : i32
    %c0_i32_0 = arith.constant 0 : i32
    return %arg0, %c0_i32 : i32, i32
  }
}

module attributes {stable_mosaic.version = 11 : i64} {
  func.func @_mha_kernel(%arg0: i32, %arg1: memref<1x17x96xbf16, #tpu.memory_space<vmem>>, %arg2: memref<1x17x32xbf16, #tpu.memory_space<vmem>>) attributes {dimension_semantics = [#tpu.dimension_semantics<parallel>], iteration_bounds = array<i64: 2>, scalar_prefetch = 0 : i64, scratch_operands = 0 : i64, tpu.core_type = #tpu.core_type<tc>, window_params = [{transform_indices = @transform_0, window_bounds = array<i64: 1, 17, 96>}, {transform_indices = @transform_1, window_bounds = array<i64: 1, 17, 32>}]} {
    %c0 = arith.constant 0 : index
    %c0_0 = arith.constant 0 : index
    %c0_1 = arith.constant 0 : index
    %0 = vector.load %arg1[%c0, %c0_0, %c0_1] : memref<1x17x96xbf16, #tpu.memory_space<vmem>>, vector<1x17x8xbf16>
    %1 = vector.shape_cast %0 : vector<1x17x8xbf16> to vector<17x8xbf16>
    %c0_2 = arith.constant 0 : index
    %c0_3 = arith.constant 0 : index
    %c32 = arith.constant 32 : index
    %2 = vector.load %arg1[%c0_2, %c0_3, %c32] : memref<1x17x96xbf16, #tpu.memory_space<vmem>>, vector<1x17x8xbf16>
    %3 = vector.shape_cast %2 : vector<1x17x8xbf16> to vector<17x8xbf16>
    %c0_4 = arith.constant 0 : index
    %c0_5 = arith.constant 0 : index
    %c64 = arith.constant 64 : index
    %4 = vector.load %arg1[%c0_4, %c0_5, %c64] : memref<1x17x96xbf16, #tpu.memory_space<vmem>>, vector<1x17x8xbf16>
    %5 = vector.shape_cast %4 : vector<1x17x8xbf16> to vector<17x8xbf16>
    "tpu.trace_start"() <{level = 10 : i32, message = "qd,kd->qk"}> : () -> ()
    %cst = arith.constant dense<0.000000e+00> : vector<17x17xf32>
    %6 = tpu.matmul %1, %3, %cst {dimension_numbers = #tpu.dot_dimension_numbers<[1], [1], [0], [0], [0, 0, 1, 0], [], []>} : vector<17x8xbf16>, vector<17x8xbf16>, vector<17x17xf32> -> vector<17x17xf32>
    "tpu.trace_stop"() : () -> ()
    %cst_6 = arith.constant dense<0xFF800000> : vector<17xf32>
    %7 = vector.multi_reduction <maximumf>, %6, %cst_6 [1] : vector<17x17xf32> to vector<17xf32>
    %8 = vector.shape_cast %7 : vector<17xf32> to vector<17x1xf32>
    %9 = vector.broadcast %8 : vector<17x1xf32> to vector<17x17xf32>
    %10 = arith.subf %6, %9 : vector<17x17xf32>
    %11 = math.exp %10 : vector<17x17xf32>
    %cst_7 = arith.constant dense<0.000000e+00> : vector<17xf32>
    %12 = vector.multi_reduction <add>, %11, %cst_7 [1] : vector<17x17xf32> to vector<17xf32>
    %13 = vector.shape_cast %12 : vector<17xf32> to vector<17x1xf32>
    %14 = arith.truncf %11 : vector<17x17xf32> to vector<17x17xbf16>
    %cst_8 = arith.constant dense<0.000000e+00> : vector<17x8xf32>
    %15 = tpu.matmul %14, %5, %cst_8 {dimension_numbers = #tpu.dot_dimension_numbers<[1], [0], [0], [1], [0, 0, 1, 1], [], []>} : vector<17x17xbf16>, vector<17x8xbf16>, vector<17x8xf32> -> vector<17x8xf32>
    %16 = tpu.reciprocal %13 {approx = true} : vector<17x1xf32> -> vector<17x1xf32>
    %17 = vector.broadcast %16 : vector<17x1xf32> to vector<17x8xf32>
    %18 = arith.mulf %15, %17 : vector<17x8xf32>
    %c0_9 = arith.constant 0 : index
    %c0_10 = arith.constant 0 : index
    %c8 = arith.constant 8 : index
    %19 = vector.load %arg1[%c0_9, %c0_10, %c8] : memref<1x17x96xbf16, #tpu.memory_space<vmem>>, vector<1x17x8xbf16>
    %20 = vector.shape_cast %19 : vector<1x17x8xbf16> to vector<17x8xbf16>
    %c0_11 = arith.constant 0 : index
    %c0_12 = arith.constant 0 : index
    %c40 = arith.constant 40 : index
    %21 = vector.load %arg1[%c0_11, %c0_12, %c40] : memref<1x17x96xbf16, #tpu.memory_space<vmem>>, vector<1x17x8xbf16>
    %22 = vector.shape_cast %21 : vector<1x17x8xbf16> to vector<17x8xbf16>
    %c0_13 = arith.constant 0 : index
    %c0_14 = arith.constant 0 : index
    %c72 = arith.constant 72 : index
    %23 = vector.load %arg1[%c0_13, %c0_14, %c72] : memref<1x17x96xbf16, #tpu.memory_space<vmem>>, vector<1x17x8xbf16>
    %24 = vector.shape_cast %23 : vector<1x17x8xbf16> to vector<17x8xbf16>
    "tpu.trace_start"() <{level = 10 : i32, message = "qd,kd->qk"}> : () -> ()
    %cst_15 = arith.constant dense<0.000000e+00> : vector<17x17xf32>
    %25 = tpu.matmul %20, %22, %cst_15 {dimension_numbers = #tpu.dot_dimension_numbers<[1], [1], [0], [0], [0, 0, 1, 0], [], []>} : vector<17x8xbf16>, vector<17x8xbf16>, vector<17x17xf32> -> vector<17x17xf32>
    "tpu.trace_stop"() : () -> ()
    %cst_16 = arith.constant dense<0xFF800000> : vector<17xf32>
    %26 = vector.multi_reduction <maximumf>, %25, %cst_16 [1] : vector<17x17xf32> to vector<17xf32>
    %27 = vector.shape_cast %26 : vector<17xf32> to vector<17x1xf32>
    %28 = vector.broadcast %27 : vector<17x1xf32> to vector<17x17xf32>
    %29 = arith.subf %25, %28 : vector<17x17xf32>
    %30 = math.exp %29 : vector<17x17xf32>
    %cst_17 = arith.constant dense<0.000000e+00> : vector<17xf32>
    %31 = vector.multi_reduction <add>, %30, %cst_17 [1] : vector<17x17xf32> to vector<17xf32>
    %32 = vector.shape_cast %31 : vector<17xf32> to vector<17x1xf32>
    %33 = arith.truncf %30 : vector<17x17xf32> to vector<17x17xbf16>
    %cst_18 = arith.constant dense<0.000000e+00> : vector<17x8xf32>
    %34 = tpu.matmul %33, %24, %cst_18 {dimension_numbers = #tpu.dot_dimension_numbers<[1], [0], [0], [1], [0, 0, 1, 1], [], []>} : vector<17x17xbf16>, vector<17x8xbf16>, vector<17x8xf32> -> vector<17x8xf32>
    %35 = tpu.reciprocal %32 {approx = true} : vector<17x1xf32> -> vector<17x1xf32>
    %36 = vector.broadcast %35 : vector<17x1xf32> to vector<17x8xf32>
    %37 = arith.mulf %34, %36 : vector<17x8xf32>
    %c0_19 = arith.constant 0 : index
    %c0_20 = arith.constant 0 : index
    %c16 = arith.constant 16 : index
    %38 = vector.load %arg1[%c0_19, %c0_20, %c16] : memref<1x17x96xbf16, #tpu.memory_space<vmem>>, vector<1x17x8xbf16>
    %39 = vector.shape_cast %38 : vector<1x17x8xbf16> to vector<17x8xbf16>
    %c0_21 = arith.constant 0 : index
    %c0_22 = arith.constant 0 : index
    %c48 = arith.constant 48 : index
    %40 = vector.load %arg1[%c0_21, %c0_22, %c48] : memref<1x17x96xbf16, #tpu.memory_space<vmem>>, vector<1x17x8xbf16>
    %41 = vector.shape_cast %40 : vector<1x17x8xbf16> to vector<17x8xbf16>
    %c0_23 = arith.constant 0 : index
    %c0_24 = arith.constant 0 : index
    %c80 = arith.constant 80 : index
    %42 = vector.load %arg1[%c0_23, %c0_24, %c80] : memref<1x17x96xbf16, #tpu.memory_space<vmem>>, vector<1x17x8xbf16>
    %43 = vector.shape_cast %42 : vector<1x17x8xbf16> to vector<17x8xbf16>
    "tpu.trace_start"() <{level = 10 : i32, message = "qd,kd->qk"}> : () -> ()
    %cst_25 = arith.constant dense<0.000000e+00> : vector<17x17xf32>
    %44 = tpu.matmul %39, %41, %cst_25 {dimension_numbers = #tpu.dot_dimension_numbers<[1], [1], [0], [0], [0, 0, 1, 0], [], []>} : vector<17x8xbf16>, vector<17x8xbf16>, vector<17x17xf32> -> vector<17x17xf32>
    "tpu.trace_stop"() : () -> ()
    %cst_26 = arith.constant dense<0xFF800000> : vector<17xf32>
    %45 = vector.multi_reduction <maximumf>, %44, %cst_26 [1] : vector<17x17xf32> to vector<17xf32>
    %46 = vector.shape_cast %45 : vector<17xf32> to vector<17x1xf32>
    %47 = vector.broadcast %46 : vector<17x1xf32> to vector<17x17xf32>
    %48 = arith.subf %44, %47 : vector<17x17xf32>
    %49 = math.exp %48 : vector<17x17xf32>
    %cst_27 = arith.constant dense<0.000000e+00> : vector<17xf32>
    %50 = vector.multi_reduction <add>, %49, %cst_27 [1] : vector<17x17xf32> to vector<17xf32>
    %51 = vector.shape_cast %50 : vector<17xf32> to vector<17x1xf32>
    %52 = arith.truncf %49 : vector<17x17xf32> to vector<17x17xbf16>
    %cst_28 = arith.constant dense<0.000000e+00> : vector<17x8xf32>
    %53 = tpu.matmul %52, %43, %cst_28 {dimension_numbers = #tpu.dot_dimension_numbers<[1], [0], [0], [1], [0, 0, 1, 1], [], []>} : vector<17x17xbf16>, vector<17x8xbf16>, vector<17x8xf32> -> vector<17x8xf32>
    %54 = tpu.reciprocal %51 {approx = true} : vector<17x1xf32> -> vector<17x1xf32>
    %55 = vector.broadcast %54 : vector<17x1xf32> to vector<17x8xf32>
    %56 = arith.mulf %53, %55 : vector<17x8xf32>
    %c0_29 = arith.constant 0 : index
    %c0_30 = arith.constant 0 : index
    %c24 = arith.constant 24 : index
    %57 = vector.load %arg1[%c0_29, %c0_30, %c24] : memref<1x17x96xbf16, #tpu.memory_space<vmem>>, vector<1x17x8xbf16>
    %58 = vector.shape_cast %57 : vector<1x17x8xbf16> to vector<17x8xbf16>
    %c0_31 = arith.constant 0 : index
    %c0_32 = arith.constant 0 : index
    %c56 = arith.constant 56 : index
    %59 = vector.load %arg1[%c0_31, %c0_32, %c56] : memref<1x17x96xbf16, #tpu.memory_space<vmem>>, vector<1x17x8xbf16>
    %60 = vector.shape_cast %59 : vector<1x17x8xbf16> to vector<17x8xbf16>
    %c0_33 = arith.constant 0 : index
    %c0_34 = arith.constant 0 : index
    %c88 = arith.constant 88 : index
    %61 = vector.load %arg1[%c0_33, %c0_34, %c88] : memref<1x17x96xbf16, #tpu.memory_space<vmem>>, vector<1x17x8xbf16>
    %62 = vector.shape_cast %61 : vector<1x17x8xbf16> to vector<17x8xbf16>
    "tpu.trace_start"() <{level = 10 : i32, message = "qd,kd->qk"}> : () -> ()
    %cst_35 = arith.constant dense<0.000000e+00> : vector<17x17xf32>
    %63 = tpu.matmul %58, %60, %cst_35 {dimension_numbers = #tpu.dot_dimension_numbers<[1], [1], [0], [0], [0, 0, 1, 0], [], []>} : vector<17x8xbf16>, vector<17x8xbf16>, vector<17x17xf32> -> vector<17x17xf32>
    "tpu.trace_stop"() : () -> ()
    %cst_36 = arith.constant dense<0xFF800000> : vector<17xf32>
    %64 = vector.multi_reduction <maximumf>, %63, %cst_36 [1] : vector<17x17xf32> to vector<17xf32>
    %65 = vector.shape_cast %64 : vector<17xf32> to vector<17x1xf32>
    %66 = vector.broadcast %65 : vector<17x1xf32> to vector<17x17xf32>
    %67 = arith.subf %63, %66 : vector<17x17xf32>
    %68 = math.exp %67 : vector<17x17xf32>
    %cst_37 = arith.constant dense<0.000000e+00> : vector<17xf32>
    %69 = vector.multi_reduction <add>, %68, %cst_37 [1] : vector<17x17xf32> to vector<17xf32>
    %70 = vector.shape_cast %69 : vector<17xf32> to vector<17x1xf32>
    %71 = arith.truncf %68 : vector<17x17xf32> to vector<17x17xbf16>
    %cst_38 = arith.constant dense<0.000000e+00> : vector<17x8xf32>
    %72 = tpu.matmul %71, %62, %cst_38 {dimension_numbers = #tpu.dot_dimension_numbers<[1], [0], [0], [1], [0, 0, 1, 1], [], []>} : vector<17x17xbf16>, vector<17x8xbf16>, vector<17x8xf32> -> vector<17x8xf32>
    %73 = tpu.reciprocal %70 {approx = true} : vector<17x1xf32> -> vector<17x1xf32>
    %74 = vector.broadcast %73 : vector<17x1xf32> to vector<17x8xf32>
    %75 = arith.mulf %72, %74 : vector<17x8xf32>
    %76 = tpu.concatenate %18, %37, %56, %75 in 1 : vector<17x8xf32>, vector<17x8xf32>, vector<17x8xf32>, vector<17x8xf32> -> vector<17x32xf32>
    %77 = arith.truncf %76 : vector<17x32xf32> to vector<17x32xbf16>
    %c0_39 = arith.constant 0 : index
    %c0_40 = arith.constant 0 : index
    %c0_41 = arith.constant 0 : index
    %78 = vector.load %arg2[%c0_39, %c0_40, %c0_41] : memref<1x17x32xbf16, #tpu.memory_space<vmem>>, vector<1x17x32xbf16>
    %79 = vector.shape_cast %78 : vector<1x17x32xbf16> to vector<17x32xbf16>
    %80 = vector.shape_cast %77 : vector<17x32xbf16> to vector<1x17x32xbf16>
    tpu.vector_store %arg2[%c0_39, %c0_40, %c0_41], %80 {strides = array<i32>} : memref<1x17x32xbf16, #tpu.memory_space<vmem>>, vector<1x17x32xbf16>,
    return
  }
  func.func @transform_0(%arg0: i32) -> (i32, i32, i32) {
    %c0_i32 = arith.constant 0 : i32
    %c0_i32_0 = arith.constant 0 : i32
    %c0_i32_1 = arith.constant 0 : i32
    return %arg0, %c0_i32, %c0_i32_0 : i32, i32, i32
  }
  func.func @transform_1(%arg0: i32) -> (i32, i32, i32) {
    %c0_i32 = arith.constant 0 : i32
    %c0_i32_0 = arith.constant 0 : i32
    %c0_i32_1 = arith.constant 0 : i32
    return %arg0, %c0_i32, %c0_i32_0 : i32, i32, i32
  }
}

module attributes {stable_mosaic.version = 11 : i64} {
  func.func @_ffn_res_ln_kernel(%arg0: i32, %arg1: memref<34x32xbf16, #tpu.memory_space<vmem>>, %arg2: memref<32x128xbf16, #tpu.memory_space<vmem>>, %arg3: memref<1x128xf32, #tpu.memory_space<vmem>>, %arg4: memref<128x32xbf16, #tpu.memory_space<vmem>>, %arg5: memref<1x32xf32, #tpu.memory_space<vmem>>, %arg6: memref<1x32xf32, #tpu.memory_space<vmem>>, %arg7: memref<1x32xf32, #tpu.memory_space<vmem>>, %arg8: memref<34x32xbf16, #tpu.memory_space<vmem>>, %arg9: memref<34x32xf32, #tpu.memory_space<vmem>>) attributes {dimension_semantics = [#tpu.dimension_semantics<parallel>], iteration_bounds = array<i64: 1>, scalar_prefetch = 0 : i64, scratch_operands = 1 : i64, tpu.core_type = #tpu.core_type<tc>, window_params = [{transform_indices = @transform_0, window_bounds = array<i64: 34, 32>}, {pipeline_mode = #tpu.pipeline_mode<synchronous>, transform_indices = @transform_1, window_bounds = array<i64: 32, 128>}, {pipeline_mode = #tpu.pipeline_mode<synchronous>, transform_indices = @transform_2, window_bounds = array<i64: 1, 128>}, {pipeline_mode = #tpu.pipeline_mode<synchronous>, transform_indices = @transform_3, window_bounds = array<i64: 128, 32>}, {pipeline_mode = #tpu.pipeline_mode<synchronous>, transform_indices = @transform_4, window_bounds = array<i64: 1, 32>}, {pipeline_mode = #tpu.pipeline_mode<synchronous>, transform_indices = @transform_5, window_bounds = array<i64: 1, 32>}, {pipeline_mode = #tpu.pipeline_mode<synchronous>, transform_indices = @transform_6, window_bounds = array<i64: 1, 32>}, {transform_indices = @transform_7, window_bounds = array<i64: 34, 32>}]} {
    %c0 = arith.constant 0 : index
    %c0_0 = arith.constant 0 : index
    %0 = vector.load %arg1[%c0, %c0_0] : memref<34x32xbf16, #tpu.memory_space<vmem>>, vector<34x32xbf16>
    %cst = arith.constant 0.000000e+00 : f32
    %1 = vector.broadcast %cst : f32 to vector<34x32xf32>
    %c0_1 = arith.constant 0 : index
    %c0_2 = arith.constant 0 : index
    %2 = vector.load %arg9[%c0_1, %c0_2] : memref<34x32xf32, #tpu.memory_space<vmem>>, vector<34x32xf32>
    tpu.vector_store %arg9[%c0_1, %c0_2], %1 {strides = array<i32>} : memref<34x32xf32, #tpu.memory_space<vmem>>, vector<34x32xf32>,
    %c0_3 = arith.constant 0 : index
    %c0_4 = arith.constant 0 : index
    %3 = vector.load %arg2[%c0_3, %c0_4] : memref<32x128xbf16, #tpu.memory_space<vmem>>, vector<32x128xbf16>
    %cst_5 = arith.constant dense<0.000000e+00> : vector<34x128xf32>
    %4 = tpu.matmul %0, %3, %cst_5 {dimension_numbers = #tpu.dot_dimension_numbers<[1], [0], [0], [1], [0, 0, 1, 1], [], []>} : vector<34x32xbf16>, vector<32x128xbf16>, vector<34x128xf32> -> vector<34x128xf32>
    %c0_6 = arith.constant 0 : index
    %c0_7 = arith.constant 0 : index
    %5 = vector.load %arg3[%c0_6, %c0_7] : memref<1x128xf32, #tpu.memory_space<vmem>>, vector<1x128xf32>
    %6 = vector.broadcast %5 : vector<1x128xf32> to vector<34x128xf32>
    %7 = arith.addf %4, %6 : vector<34x128xf32>
    %cst_8 = arith.constant 0.000000e+00 : f32
    %8 = vector.broadcast %cst_8 : f32 to vector<34x128xf32>
    %9 = arith.maximumf %7, %8 : vector<34x128xf32>
    %c0_9 = arith.constant 0 : index
    %c0_10 = arith.constant 0 : index
    %10 = vector.load %arg9[%c0_9, %c0_10] : memref<34x32xf32, #tpu.memory_space<vmem>>, vector<34x32xf32>
    %11 = arith.truncf %9 : vector<34x128xf32> to vector<34x128xbf16>
    %c0_11 = arith.constant 0 : index
    %c0_12 = arith.constant 0 : index
    %12 = vector.load %arg4[%c0_11, %c0_12] : memref<128x32xbf16, #tpu.memory_space<vmem>>, vector<128x32xbf16>
    %cst_13 = arith.constant dense<0.000000e+00> : vector<34x32xf32>
    %13 = tpu.matmul %11, %12, %cst_13 {dimension_numbers = #tpu.dot_dimension_numbers<[1], [0], [0], [1], [0, 0, 1, 1], [], []>} : vector<34x128xbf16>, vector<128x32xbf16>, vector<34x32xf32> -> vector<34x32xf32>
    %14 = arith.addf %10, %13 : vector<34x32xf32>
    %c0_14 = arith.constant 0 : index
    %c0_15 = arith.constant 0 : index
    %15 = vector.load %arg9[%c0_14, %c0_15] : memref<34x32xf32, #tpu.memory_space<vmem>>, vector<34x32xf32>
    tpu.vector_store %arg9[%c0_14, %c0_15], %14 {strides = array<i32>} : memref<34x32xf32, #tpu.memory_space<vmem>>, vector<34x32xf32>,
    %c0_16 = arith.constant 0 : index
    %c0_17 = arith.constant 0 : index
    %16 = vector.load %arg9[%c0_16, %c0_17] : memref<34x32xf32, #tpu.memory_space<vmem>>, vector<34x32xf32>
    %c0_18 = arith.constant 0 : index
    %c0_19 = arith.constant 0 : index
    %17 = vector.load %arg5[%c0_18, %c0_19] : memref<1x32xf32, #tpu.memory_space<vmem>>, vector<1x32xf32>
    %18 = vector.broadcast %17 : vector<1x32xf32> to vector<34x32xf32>
    %19 = arith.addf %16, %18 : vector<34x32xf32>
    %20 = arith.extf %0 : vector<34x32xbf16> to vector<34x32xf32>
    %21 = arith.addf %19, %20 : vector<34x32xf32>
    %cst_20 = arith.constant dense<0.000000e+00> : vector<34xf32>
    %22 = vector.multi_reduction <add>, %21, %cst_20 [1] : vector<34x32xf32> to vector<34xf32>
    %23 = vector.shape_cast %22 : vector<34xf32> to vector<34x1xf32>
    %cst_21 = arith.constant 3.200000e+01 : f32
    %24 = vector.broadcast %cst_21 : f32 to vector<34x1xf32>
    %25 = arith.divf %23, %24 : vector<34x1xf32>
    %26 = vector.broadcast %25 : vector<34x1xf32> to vector<34x32xf32>
    %27 = arith.subf %21, %26 : vector<34x32xf32>
    %28 = arith.mulf %27, %27 : vector<34x32xf32>
    %cst_22 = arith.constant dense<0.000000e+00> : vector<34xf32>
    %29 = vector.multi_reduction <add>, %28, %cst_22 [1] : vector<34x32xf32> to vector<34xf32>
    %30 = vector.shape_cast %29 : vector<34xf32> to vector<34x1xf32>
    %cst_23 = arith.constant 3.200000e+01 : f32
    %31 = vector.broadcast %cst_23 : f32 to vector<34x1xf32>
    %32 = arith.divf %30, %31 : vector<34x1xf32>
    %33 = vector.broadcast %25 : vector<34x1xf32> to vector<34x32xf32>
    %34 = arith.subf %21, %33 : vector<34x32xf32>
    %cst_24 = arith.constant 9.99999974E-6 : f32
    %35 = vector.broadcast %cst_24 : f32 to vector<34x1xf32>
    %36 = arith.addf %32, %35 : vector<34x1xf32>
    %37 = math.rsqrt %36 : vector<34x1xf32>
    %38 = vector.broadcast %37 : vector<34x1xf32> to vector<34x32xf32>
    %39 = arith.mulf %34, %38 : vector<34x32xf32>
    %c0_25 = arith.constant 0 : index
    %c0_26 = arith.constant 0 : index
    %40 = vector.load %arg6[%c0_25, %c0_26] : memref<1x32xf32, #tpu.memory_space<vmem>>, vector<1x32xf32>
    %41 = vector.broadcast %40 : vector<1x32xf32> to vector<34x32xf32>
    %42 = arith.mulf %39, %41 : vector<34x32xf32>
    %c0_27 = arith.constant 0 : index
    %c0_28 = arith.constant 0 : index
    %43 = vector.load %arg7[%c0_27, %c0_28] : memref<1x32xf32, #tpu.memory_space<vmem>>, vector<1x32xf32>
    %44 = vector.broadcast %43 : vector<1x32xf32> to vector<34x32xf32>
    %45 = arith.addf %42, %44 : vector<34x32xf32>
    %46 = arith.truncf %45 : vector<34x32xf32> to vector<34x32xbf16>
    %c0_29 = arith.constant 0 : index
    %c0_30 = arith.constant 0 : index
    %47 = vector.load %arg8[%c0_29, %c0_30] : memref<34x32xbf16, #tpu.memory_space<vmem>>, vector<34x32xbf16>
    tpu.vector_store %arg8[%c0_29, %c0_30], %46 {strides = array<i32>} : memref<34x32xbf16, #tpu.memory_space<vmem>>, vector<34x32xbf16>,
    return
  }
  func.func @transform_0(%arg0: i32) -> (i32, i32) {
    %c0_i32 = arith.constant 0 : i32
    %c0_i32_0 = arith.constant 0 : i32
    return %arg0, %c0_i32 : i32, i32
  }
  func.func @transform_1(%arg0: i32) -> (i32, i32) {
    %c0_i32 = arith.constant 0 : i32
    %c0_i32_0 = arith.constant 0 : i32
    %c0_i32_1 = arith.constant 0 : i32
    return %c0_i32, %c0_i32_0 : i32, i32
  }
  func.func @transform_2(%arg0: i32) -> (i32, i32) {
    %c0_i32 = arith.constant 0 : i32
    %c0_i32_0 = arith.constant 0 : i32
    %c0_i32_1 = arith.constant 0 : i32
    return %c0_i32, %c0_i32_0 : i32, i32
  }
  func.func @transform_3(%arg0: i32) -> (i32, i32) {
    %c0_i32 = arith.constant 0 : i32
    %c0_i32_0 = arith.constant 0 : i32
    %c0_i32_1 = arith.constant 0 : i32
    return %c0_i32, %c0_i32_0 : i32, i32
  }
  func.func @transform_4(%arg0: i32) -> (i32, i32) {
    %c0_i32 = arith.constant 0 : i32
    %c0_i32_0 = arith.constant 0 : i32
    %c0_i32_1 = arith.constant 0 : i32
    return %c0_i32, %c0_i32_0 : i32, i32
  }
  func.func @transform_5(%arg0: i32) -> (i32, i32) {
    %c0_i32 = arith.constant 0 : i32
    %c0_i32_0 = arith.constant 0 : i32
    %c0_i32_1 = arith.constant 0 : i32
    return %c0_i32, %c0_i32_0 : i32, i32
  }
  func.func @transform_6(%arg0: i32) -> (i32, i32) {
    %c0_i32 = arith.constant 0 : i32
    %c0_i32_0 = arith.constant 0 : i32
    %c0_i32_1 = arith.constant 0 : i32
    return %c0_i32, %c0_i32_0 : i32, i32
  }
  func.func @transform_7(%arg0: i32) -> (i32, i32) {
    %c0_i32 = arith.constant 0 : i32
    %c0_i32_0 = arith.constant 0 : i32
    return %arg0, %c0_i32 : i32, i32
  }
}

module attributes {stable_mosaic.version = 11 : i64} {
  func.func @_linear_kernel(%arg0: i32, %arg1: i32, %arg2: i32, %arg3: memref<2x32xbf16, #tpu.memory_space<vmem>>, %arg4: memref<32x128xbf16, #tpu.memory_space<vmem>>, %arg5: memref<1x128xf32, #tpu.memory_space<vmem>>, %arg6: memref<2x128xbf16, #tpu.memory_space<vmem>>, %arg7: memref<2x128xf32, #tpu.memory_space<vmem>>) attributes {dimension_semantics = [#tpu.dimension_semantics<parallel>, #tpu.dimension_semantics<parallel>, #tpu.dimension_semantics<arbitrary>], iteration_bounds = array<i64: 1, 1, 1>, scalar_prefetch = 0 : i64, scratch_operands = 1 : i64, tpu.core_type = #tpu.core_type<tc>, window_params = [{transform_indices = @transform_0, window_bounds = array<i64: 2, 32>}, {transform_indices = @transform_1, window_bounds = array<i64: 32, 128>}, {transform_indices = @transform_2, window_bounds = array<i64: 1, 128>}, {transform_indices = @transform_3, window_bounds = array<i64: 2, 128>}]} {
    %c0_i32 = arith.constant 0 : i32
    %0 = arith.cmpi eq, %arg2, %c0_i32 : i32
    %1 = arith.extui %0 : i1 to i32
    %c0_i32_0 = arith.constant 0 : i32
    %2 = arith.cmpi ne, %1, %c0_i32_0 : i32
    scf.if %2 {
      %cst_10 = arith.constant 0.000000e+00 : f32
      %12 = vector.broadcast %cst_10 : f32 to vector<2x128xf32>
      %c0_11 = arith.constant 0 : index
      %c0_12 = arith.constant 0 : index
      %13 = vector.load %arg7[%c0_11, %c0_12] : memref<2x128xf32, #tpu.memory_space<vmem>>, vector<2x128xf32>
      tpu.vector_store %arg7[%c0_11, %c0_12], %12 {strides = array<i32>} : memref<2x128xf32, #tpu.memory_space<vmem>>, vector<2x128xf32>,
    } else {
    }
    %c0 = arith.constant 0 : index
    %c0_1 = arith.constant 0 : index
    %3 = vector.load %arg7[%c0, %c0_1] : memref<2x128xf32, #tpu.memory_space<vmem>>, vector<2x128xf32>
    %c0_2 = arith.constant 0 : index
    %c0_3 = arith.constant 0 : index
    %4 = vector.load %arg3[%c0_2, %c0_3] : memref<2x32xbf16, #tpu.memory_space<vmem>>, vector<2x32xbf16>
    %c0_4 = arith.constant 0 : index
    %c0_5 = arith.constant 0 : index
    %5 = vector.load %arg4[%c0_4, %c0_5] : memref<32x128xbf16, #tpu.memory_space<vmem>>, vector<32x128xbf16>
    %cst = arith.constant dense<0.000000e+00> : vector<2x128xf32>
    %6 = tpu.matmul %4, %5, %cst {dimension_numbers = #tpu.dot_dimension_numbers<[1], [0], [0], [1], [0, 0, 1, 1], [], []>} : vector<2x32xbf16>, vector<32x128xbf16>, vector<2x128xf32> -> vector<2x128xf32>
    %7 = arith.addf %3, %6 : vector<2x128xf32>
    %c0_6 = arith.constant 0 : index
    %c0_7 = arith.constant 0 : index
    %8 = vector.load %arg7[%c0_6, %c0_7] : memref<2x128xf32, #tpu.memory_space<vmem>>, vector<2x128xf32>
    tpu.vector_store %arg7[%c0_6, %c0_7], %7 {strides = array<i32>} : memref<2x128xf32, #tpu.memory_space<vmem>>, vector<2x128xf32>,
    %c0_i32_8 = arith.constant 0 : i32
    %9 = arith.cmpi eq, %arg2, %c0_i32_8 : i32
    %10 = arith.extui %9 : i1 to i32
    %c0_i32_9 = arith.constant 0 : i32
    %11 = arith.cmpi ne, %10, %c0_i32_9 : i32
    scf.if %11 {
      %c0_10 = arith.constant 0 : index
      %c0_11 = arith.constant 0 : index
      %12 = vector.load %arg7[%c0_10, %c0_11] : memref<2x128xf32, #tpu.memory_space<vmem>>, vector<2x128xf32>
      %c0_12 = arith.constant 0 : index
      %c0_13 = arith.constant 0 : index
      %13 = vector.load %arg5[%c0_12, %c0_13] : memref<1x128xf32, #tpu.memory_space<vmem>>, vector<1x128xf32>
      %14 = vector.broadcast %13 : vector<1x128xf32> to vector<2x128xf32>
      %15 = arith.addf %12, %14 : vector<2x128xf32>
      %cst_14 = arith.constant 5.000000e-01 : f32
      %16 = vector.broadcast %cst_14 : f32 to vector<2x128xf32>
      %17 = arith.mulf %16, %15 : vector<2x128xf32>
      %cst_15 = arith.constant 0.707106769 : f32
      %18 = vector.broadcast %cst_15 : f32 to vector<2x128xf32>
      %19 = arith.mulf %15, %18 : vector<2x128xf32>
      %20 = math.erf %19 : vector<2x128xf32>
      %cst_16 = arith.constant 1.000000e+00 : f32
      %21 = vector.broadcast %cst_16 : f32 to vector<2x128xf32>
      %22 = arith.addf %21, %20 : vector<2x128xf32>
      %23 = arith.mulf %17, %22 : vector<2x128xf32>
      %24 = arith.truncf %23 : vector<2x128xf32> to vector<2x128xbf16>
      %c0_17 = arith.constant 0 : index
      %c0_18 = arith.constant 0 : index
      %25 = vector.load %arg6[%c0_17, %c0_18] : memref<2x128xbf16, #tpu.memory_space<vmem>>, vector<2x128xbf16>
      tpu.vector_store %arg6[%c0_17, %c0_18], %24 {strides = array<i32>} : memref<2x128xbf16, #tpu.memory_space<vmem>>, vector<2x128xbf16>,
    } else {
    }
    return
  }
  func.func @transform_0(%arg0: i32, %arg1: i32, %arg2: i32) -> (i32, i32) {
    %c0_i32 = arith.constant 0 : i32
    return %arg0, %arg2 : i32, i32
  }
  func.func @transform_1(%arg0: i32, %arg1: i32, %arg2: i32) -> (i32, i32) {
    %c0_i32 = arith.constant 0 : i32
    return %arg2, %arg1 : i32, i32
  }
  func.func @transform_2(%arg0: i32, %arg1: i32, %arg2: i32) -> (i32, i32) {
    %c0_i32 = arith.constant 0 : i32
    %c0_i32_0 = arith.constant 0 : i32
    return %c0_i32, %arg1 : i32, i32
  }
  func.func @transform_3(%arg0: i32, %arg1: i32, %arg2: i32) -> (i32, i32) {
    %c0_i32 = arith.constant 0 : i32
    return %arg0, %arg1 : i32, i32
  }
}

module attributes {stable_mosaic.version = 11 : i64} {
  func.func @_linear_kernel(%arg0: i32, %arg1: i32, %arg2: i32, %arg3: memref<2x128xbf16, #tpu.memory_space<vmem>>, %arg4: memref<128x128xbf16, #tpu.memory_space<vmem>>, %arg5: memref<1x128xf32, #tpu.memory_space<vmem>>, %arg6: memref<2x128xbf16, #tpu.memory_space<vmem>>, %arg7: memref<2x128xf32, #tpu.memory_space<vmem>>) attributes {dimension_semantics = [#tpu.dimension_semantics<parallel>, #tpu.dimension_semantics<parallel>, #tpu.dimension_semantics<arbitrary>], iteration_bounds = array<i64: 1, 1, 1>, scalar_prefetch = 0 : i64, scratch_operands = 1 : i64, tpu.core_type = #tpu.core_type<tc>, window_params = [{transform_indices = @transform_0, window_bounds = array<i64: 2, 128>}, {transform_indices = @transform_1, window_bounds = array<i64: 128, 128>}, {transform_indices = @transform_2, window_bounds = array<i64: 1, 128>}, {transform_indices = @transform_3, window_bounds = array<i64: 2, 128>}]} {
    %c0_i32 = arith.constant 0 : i32
    %0 = arith.cmpi eq, %arg2, %c0_i32 : i32
    %1 = arith.extui %0 : i1 to i32
    %c0_i32_0 = arith.constant 0 : i32
    %2 = arith.cmpi ne, %1, %c0_i32_0 : i32
    scf.if %2 {
      %cst_10 = arith.constant 0.000000e+00 : f32
      %12 = vector.broadcast %cst_10 : f32 to vector<2x128xf32>
      %c0_11 = arith.constant 0 : index
      %c0_12 = arith.constant 0 : index
      %13 = vector.load %arg7[%c0_11, %c0_12] : memref<2x128xf32, #tpu.memory_space<vmem>>, vector<2x128xf32>
      tpu.vector_store %arg7[%c0_11, %c0_12], %12 {strides = array<i32>} : memref<2x128xf32, #tpu.memory_space<vmem>>, vector<2x128xf32>,
    } else {
    }
    %c0 = arith.constant 0 : index
    %c0_1 = arith.constant 0 : index
    %3 = vector.load %arg7[%c0, %c0_1] : memref<2x128xf32, #tpu.memory_space<vmem>>, vector<2x128xf32>
    %c0_2 = arith.constant 0 : index
    %c0_3 = arith.constant 0 : index
    %4 = vector.load %arg3[%c0_2, %c0_3] : memref<2x128xbf16, #tpu.memory_space<vmem>>, vector<2x128xbf16>
    %c0_4 = arith.constant 0 : index
    %c0_5 = arith.constant 0 : index
    %5 = vector.load %arg4[%c0_4, %c0_5] : memref<128x128xbf16, #tpu.memory_space<vmem>>, vector<128x128xbf16>
    %cst = arith.constant dense<0.000000e+00> : vector<2x128xf32>
    %6 = tpu.matmul %4, %5, %cst {dimension_numbers = #tpu.dot_dimension_numbers<[1], [0], [0], [1], [0, 0, 1, 1], [], []>} : vector<2x128xbf16>, vector<128x128xbf16>, vector<2x128xf32> -> vector<2x128xf32>
    %7 = arith.addf %3, %6 : vector<2x128xf32>
    %c0_6 = arith.constant 0 : index
    %c0_7 = arith.constant 0 : index
    %8 = vector.load %arg7[%c0_6, %c0_7] : memref<2x128xf32, #tpu.memory_space<vmem>>, vector<2x128xf32>
    tpu.vector_store %arg7[%c0_6, %c0_7], %7 {strides = array<i32>} : memref<2x128xf32, #tpu.memory_space<vmem>>, vector<2x128xf32>,
    %c0_i32_8 = arith.constant 0 : i32
    %9 = arith.cmpi eq, %arg2, %c0_i32_8 : i32
    %10 = arith.extui %9 : i1 to i32
    %c0_i32_9 = arith.constant 0 : i32
    %11 = arith.cmpi ne, %10, %c0_i32_9 : i32
    scf.if %11 {
      %c0_10 = arith.constant 0 : index
      %c0_11 = arith.constant 0 : index
      %12 = vector.load %arg7[%c0_10, %c0_11] : memref<2x128xf32, #tpu.memory_space<vmem>>, vector<2x128xf32>
      %c0_12 = arith.constant 0 : index
      %c0_13 = arith.constant 0 : index
      %13 = vector.load %arg5[%c0_12, %c0_13] : memref<1x128xf32, #tpu.memory_space<vmem>>, vector<1x128xf32>
      %14 = vector.broadcast %13 : vector<1x128xf32> to vector<2x128xf32>
      %15 = arith.addf %12, %14 : vector<2x128xf32>
      %16 = arith.truncf %15 : vector<2x128xf32> to vector<2x128xbf16>
      %c0_14 = arith.constant 0 : index
      %c0_15 = arith.constant 0 : index
      %17 = vector.load %arg6[%c0_14, %c0_15] : memref<2x128xbf16, #tpu.memory_space<vmem>>, vector<2x128xbf16>
      tpu.vector_store %arg6[%c0_14, %c0_15], %16 {strides = array<i32>} : memref<2x128xbf16, #tpu.memory_space<vmem>>, vector<2x128xbf16>,
    } else {
    }
    return
  }
  func.func @transform_0(%arg0: i32, %arg1: i32, %arg2: i32) -> (i32, i32) {
    %c0_i32 = arith.constant 0 : i32
    return %arg0, %arg2 : i32, i32
  }
  func.func @transform_1(%arg0: i32, %arg1: i32, %arg2: i32) -> (i32, i32) {
    %c0_i32 = arith.constant 0 : i32
    return %arg2, %arg1 : i32, i32
  }
  func.func @transform_2(%arg0: i32, %arg1: i32, %arg2: i32) -> (i32, i32) {
    %c0_i32 = arith.constant 0 : i32
    %c0_i32_0 = arith.constant 0 : i32
    return %c0_i32, %arg1 : i32, i32
  }
  func.func @transform_3(%arg0: i32, %arg1: i32, %arg2: i32) -> (i32, i32) {
    %c0_i32 = arith.constant 0 : i32
    return %arg0, %arg1 : i32, i32
  }
}

</mosaic_0001>

<bundles_post_ra>
// kernel: vit_forward.11
= control target key start
LH: loop header
LB: loop body
LE: loop exit
PB: predicated region body
PF: predicated region fallthrough
CT: control target
= control target key end

     0   :  { %vm65_vm0 = vcmask 392192   ;;  %s212_s1 = inlined_call_operand.vmem [shape: bf16[48,128], index: 1, kind: input, shape index: {}]   ;;  %s213_s2 = inlined_call_operand.vmem [shape: f32[1,128], index: 2, kind: input, shape index: {}]   ;;  %s214_s0 = inlined_call_operand.vmem [shape: bf16[32,48], index: 0, kind: input, shape index: {}]   ;;  %s215_s3 = inlined_call_operand.vmem [shape: bf16[32,128], index: 3, kind: output, shape index: {}]  }
   0x1   :  { %v152_v0 = vld [vmem:[%s212_s1 + $0x10] sm:$0xff]  ;;  %v151_v1 = vld [vmem:[%s212_s1 + $0x8] sm:$0xff]  ;;  %v150_v2 = vld [vmem:[%s212_s1] sm:$0xff] }
   0x2   :  { %77 = vmatpush.bf16.msra.mxu0 %v152_v0  ;;  %164 = vmatpush.bf16.msra.mxu1 %v152_v0  ;;  %v148_v3 = vld [vmem:[%s214_s0] sm:$0xff]  ;;  %v149_v4 = vld [vmem:[%s214_s0 + $0x8] sm:$0xff] }
   0x3   :  { %v167_v7 = vld [vmem:[%s213_s2] ss:$0 sm:$0xff] }
   0x6   :  { %78 = vmatpush.bf16.msra.mxu0 %v151_v1  ;;  %165 = vmatpush.bf16.msra.mxu1 %v151_v1 }
   0xa   :  { %79 = vmatpush.bf16.msra.mxu0 %v150_v2  ;;  %166 = vmatpush.bf16.msra.mxu1 %v150_v2 }
   0xd   :  { %146 = vmatmul.msk.bf16.vlgmr.msra.gmra.mxu0 %vm65_vm0, %v148_v3  ;;  %147 = vmatmul.msk.bf16.vlgmr.msra.gmra.mxu1 %vm65_vm0, %v149_v4 }
  0x8a   :  { %v81_v5 = vpop.f32.mrf.mxu0  ;;  %v86_v6 = vpop.f32.mrf.mxu1 }
  0x8b   :  { %v110_v10 = vadd.f32 %v167_v7, %v81_v5  ;;  %v112_v11 = vadd.f32 %v167_v7, %v86_v6 }
  0x92   :  { %v83_v8 = vpop.f32.mrf.mxu0  ;;  %v88_v9 = vpop.f32.mrf.mxu1 }
  0x93   :  { %v111_v12 = vadd.f32 %v167_v7, %v83_v8  ;;  %v113_v13 = vadd.f32 %v167_v7, %v88_v9 }
  0x95   :  { %v156_v14 = vpack.c.bf16 %v111_v12, %v110_v10  ;;  %v161_v15 = vpack.c.bf16 %v113_v13, %v112_v11 }
  0x97   :  { %157 = vst [vmem:[%s215_s3] sm:$0xff] %v156_v14  }
  0x98   :  { %163 = vst [vmem:[%s215_s3 + $0x8] sm:$0xff] %v161_v15  }

// kernel: vit_forward.12
= control target key start
LH: loop header
LB: loop body
LE: loop exit
PB: predicated region body
PF: predicated region fallthrough
CT: control target
= control target key end

     0   :  { %v177_v1 = vmov 0.0   ;;  %vm63_vm0 = vcmask 261120   ;;  %s225_s1 = inlined_call_operand.vmem [shape: bf16[32,128], index: 1, kind: input, shape index: {}]   ;;  %s226_s0 = inlined_call_operand.vmem [shape: bf16[34,32], index: 0, kind: input, shape index: {}]   ;;  %s227_s2 = inlined_call_operand.vmem [shape: f32[1,128], index: 2, kind: input, shape index: {}]   ;;  %s228_s3 = inlined_call_operand.vmem [shape: bf16[34,128], index: 3, kind: output, shape index: {}]  }
   0x1   :  { %v159_v0 = vld [vmem:[%s225_s1 + $0x8] sm:$0xff]  ;;  %23 = vst [vmem:[#allocation2 + $0x18] sm:$0x3] %v177_v1  ;;  %v33_v2 = vld [vmem:[%s226_s0 + $0x10] sm:$0x1]  ;;  %v158_v3 = vld [vmem:[%s225_s1] sm:$0xff] }
   0x2   :  { %79 = vmatpush.bf16.msra.mxu0 %v159_v0  ;;  %171 = vmatpush.bf16.msra.mxu1 %v159_v0  ;;  %v47_v4 = vunpack.c.l.b16 %v33_v2  ;;  %v156_v5 = vld [vmem:[%s226_s0] sm:$0xff]  ;;  %v157_v6 = vld [vmem:[%s226_s0 + $0x8] sm:$0xff] }
   0x3   :  { %172 = vmatpush.bf16.msra.mxu2 %v159_v0  ;;  %v176_v11 = vld [vmem:[%s227_s2] ss:$0 sm:$0xff] }
   0x4   :  { %v50_v7 = vpack.c.b16 %v47_v4, %v47_v4 }
   0x6   :  { %80 = vmatpush.bf16.msra.mxu0 %v158_v3  ;;  %173 = vmatpush.bf16.msra.mxu1 %v158_v3 }
   0x7   :  { %174 = vmatpush.bf16.msra.mxu2 %v158_v3 }
   0x8   :  { %v28_v10 = vld [vmem:[#allocation2 + $0x18] sm:$0x3] }
   0x9   :  { %153 = vmatmul.msk.bf16.vlgmr.msra.gmra.mxu0 %vm63_vm0, %v156_v5  ;;  %154 = vmatmul.msk.bf16.vlgmr.msra.gmra.mxu1 %vm63_vm0, %v157_v6 }
   0xa   :  { %155 = vmatmul.msk.bf16.vlgmr.msra.gmra.mxu2 %vm63_vm0, %v50_v7 }
  0x86   :  { %v82_v8 = vpop.f32.mrf.mxu0  ;;  %v87_v9 = vpop.f32.mrf.mxu1 }
  0x87   :  { %v118_v16 = vadd.f32 %v176_v11, %v82_v8  ;;  %v120_v17 = vadd.f32 %v176_v11, %v87_v9 }
  0x8d   :  { %v92_v12 = vpop.f32.mrf.mxu2 }
  0x8e   :  { %v100_v13 = vadd.f32 %v92_v12, %v28_v10  ;;  %v84_v14 = vpop.f32.mrf.mxu0  ;;  %v89_v15 = vpop.f32.mrf.mxu1 }
  0x8f   :  { %v119_v18 = vadd.f32 %v176_v11, %v84_v14  ;;  %v121_v19 = vadd.f32 %v176_v11, %v89_v15 }
  0x90   :  { %105 = vst [vmem:[#allocation2 + $0x18] sm:$0x3] %v100_v13 }
  0x91   :  { %v163_v20 = vpack.c.bf16 %v119_v18, %v118_v16  ;;  %v168_v21 = vpack.c.bf16 %v121_v19, %v120_v17 }
  0x93   :  { %164 = vst [vmem:[%s228_s3] sm:$0xff] %v163_v20  }
  0x94   :  { %170 = vst [vmem:[%s228_s3 + $0x8] sm:$0xff] %v168_v21  }
  0x95   :  { %v94_v22 = vpop.f32.mrf.mxu2 }
  0x97   :  { %v113_v23 = vld [vmem:[#allocation2 + $0x18] sm:$0x3] }
  0x98   :  { %v122_v24 = vadd.f32 %v176_v11, %v113_v23 }
  0x9a   :  { %v127_v25 = vpack.c.bf16 %v122_v24, %v122_v24 }
  0x9c   :  { %132 = vst [vmem:[%s228_s3 + $0x10] sm:$0x1] %v127_v25 }

// kernel: vit_forward.14
= control target key start
LH: loop header
LB: loop body
LE: loop exit
PB: predicated region body
PF: predicated region fallthrough
CT: control target
= control target key end

     0   :  { %vm28_vm0 = vcmask 261120   ;;  %v354_v1 = vmov 0.0   ;;  %vm33_vm1 = vcmask 254976   ;;  %v355_v53 = vmov 32.0   ;;  %s491_s1 = inlined_call_operand.vmem [shape: bf16[32,32], index: 1, kind: input, shape index: {}]   ;;  %s492_s0 = inlined_call_operand.vmem [shape: bf16[34,32], index: 0, kind: input, shape index: {}]   ;;  %s493_s2 = inlined_call_operand.vmem [shape: f32[1,32], index: 2, kind: input, shape index: {}]   ;;  %s494_s3 = inlined_call_operand.vmem [shape: bf16[34,32], index: 3, kind: input, shape index: {}]   ;;  %s495_s4 = inlined_call_operand.vmem [shape: f32[1,32], index: 4, kind: input, shape index: {}]   ;;  %s496_s5 = inlined_call_operand.vmem [shape: f32[1,32], index: 5, kind: input, shape index: {}]   ;;  %s497_s6 = inlined_call_operand.vmem [shape: bf16[34,32], index: 6, kind: output, shape index: {}]  }
   0x1   :  { %v323_v0 = vld [vmem:[%s491_s1 + $0x8] sm:$0xff]  ;;  %29 = vst.msk [vmem:[#allocation2] sm:$0xff] %vm28_vm0, %v354_v1  ;;  %v44_v2 = vld [vmem:[%s492_s0 + $0x10] sm:$0x1]  ;;  %v322_v3 = vld [vmem:[%s491_s1] sm:$0xff]  ;;  %342 = vrcp.f32 %v355_v53  ;;  %vm290_vm10 = vcmask 257024  }
   0x2   :  { %30 = vst.msk [vmem:[#allocation2 + $0x8] sm:$0xff] %vm28_vm0, %v354_v1  ;;  %90 = vmatpush.bf16.msra.mxu0 %v323_v0  ;;  %333 = vmatpush.bf16.msra.mxu1 %v323_v0  ;;  %v58_v4 = vunpack.c.l.b16 %v44_v2  ;;  %v320_v5 = vld [vmem:[%s492_s0] sm:$0xff]  ;;  %v321_v6 = vld [vmem:[%s492_s0 + $0x8] sm:$0xff]  ;;  %v139_v33 = vld [vmem:[%s494_s3 + $0x10] sm:$0x1] }
   0x3   :  { %31 = vst.msk [vmem:[#allocation2 + $0x10] sm:$0xff] %vm28_vm0, %v354_v1  ;;  %334 = vmatpush.bf16.msra.mxu2 %v323_v0  ;;  %v325_v17 = vld [vmem:[%s494_s3] sm:$0xff]   ;;  %v332_v20 = vld [vmem:[%s494_s3 + $0x8] sm:$0xff]   ;;  %v144_v38 = vunpack.c.l.bf16 %v139_v33 }
   0x4   :  { %32 = vst.msk [vmem:[#allocation2 + $0x18] sm:$0xff] %vm28_vm0, %v354_v1  ;;  %v61_v7 = vpack.c.b16 %v58_v4, %v58_v4  ;;  %v339_v19 = vld [vmem:[%s493_s2] ss:$0 sm:$0xff]  ;;  %v326_v26 = vunpack.c.l.bf16 %v325_v17  ;;  %v330_v27 = vunpack.c.l.bf16 %v332_v20  ;;  %v327_v40 = vunpack.c.h.bf16 %v325_v17 }
   0x5   :  { %34 = vst.msk [vmem:[#allocation2 + $0x20] sm:$0x3] %vm33_vm1, %v354_v1  ;;  %v331_v42 = vunpack.c.h.bf16 %v332_v20 }
   0x6   :  { %91 = vmatpush.bf16.msra.mxu0 %v322_v3  ;;  %335 = vmatpush.bf16.msra.mxu1 %v322_v3 }
   0x7   :  { %336 = vmatpush.bf16.msra.mxu2 %v322_v3  ;;  %v343_v54 = vpop.eup %342 }
   0x8   :  { %v35_v8 = vld [vmem:[#allocation2] sm:$0xff]  ;;  %v166_v55 = vmul.f32 32.0, %v343_v54  ;;  %vm170_vm2 = vweird.f32 %v343_v54 }
   0x9   :  { %317 = vmatmul.msk.bf16.vlgmr.msra.gmra.mxu0 %vm28_vm0, %v320_v5  ;;  %318 = vmatmul.msk.bf16.vlgmr.msra.gmra.mxu1 %vm28_vm0, %v321_v6  ;;  %v36_v15 = vld [vmem:[#allocation2 + $0x8] sm:$0xff] }
   0xa   :  { %319 = vmatmul.msk.bf16.vlgmr.msra.gmra.mxu2 %vm28_vm0, %v61_v7  ;;  %v37_v9 = vld [vmem:[#allocation2 + $0x10] sm:$0xff]  ;;  %v167_v56 = vsub.f32 1.0, %v166_v55  ;;  %v341_v55 = vld [vmem:[%s496_s5] ss:$0 sm:$0xff] }
   0xb   :  { %v38_v16 = vld [vmem:[#allocation2 + $0x18] sm:$0xff] }
   0xc   :  { %v39_v14 = vld [vmem:[#allocation2 + $0x20] sm:$0x3]  ;;  %v168_v57 = vmul.f32 %v343_v54, %v167_v56 }
   0xe   :  { %v169_v58 = vadd.f32 %v343_v54, %v168_v57 }
  0x10   :  { %v171_v59 = vsel %vm170_vm2, %v343_v54, %v169_v58 }
  0x86   :  { %v93_v10 = vpop.f32.mrf.mxu0  ;;  %v98_v11 = vpop.f32.mrf.mxu1 }
  0x87   :  { %v107_v12 = vadd.f32 %v93_v10, %v35_v8  ;;  %v109_v13 = vadd.f32 %v98_v11, %v37_v9 }
  0x89   :  { %112 = vst.msk [vmem:[#allocation2] sm:$0xff] %vm28_vm0, %v107_v12 }
  0x8a   :  { %114 = vst.msk [vmem:[#allocation2 + $0x10] sm:$0xff] %vm28_vm0, %v109_v13 }
  0x8d   :  { %v103_v18 = vpop.f32.mrf.mxu2 }
  0x8e   :  { %v111_v21 = vadd.f32 %v103_v18, %v39_v14  ;;  %v95_v22 = vpop.f32.mrf.mxu0  ;;  %v100_v23 = vpop.f32.mrf.mxu1 }
  0x8f   :  { %v108_v24 = vadd.f32 %v95_v22, %v36_v15  ;;  %v110_v25 = vadd.f32 %v100_v23, %v38_v16 }
  0x90   :  { %117 = vst.msk [vmem:[#allocation2 + $0x20] sm:$0x3] %vm33_vm1, %v111_v21  ;;  %v121_v28 = vld [vmem:[#allocation2] sm:$0xff] }
  0x91   :  { %113 = vst.msk [vmem:[#allocation2 + $0x8] sm:$0xff] %vm28_vm0, %v108_v24  ;;  %v123_v29 = vld [vmem:[#allocation2 + $0x10] sm:$0xff]  ;;  %v130_v30 = vadd.f32 %v339_v19, %v121_v28 }
  0x92   :  { %115 = vst.msk [vmem:[#allocation2 + $0x18] sm:$0xff] %vm28_vm0, %v110_v25  ;;  %v132_v31 = vadd.f32 %v339_v19, %v123_v29 }
  0x93   :  { %v145_v32 = vadd.f32 %v326_v26, %v130_v30 }
  0x94   :  { %v147_v34 = vadd.f32 %v330_v27, %v132_v31 }
  0x95   :  { %v105_v35 = vpop.f32.mrf.mxu2  ;;  %v150_v36 = vsel %vm28_vm0, %v145_v32, 0.0 }
  0x96   :  { %v156_v37 = vsel %vm28_vm0, %v147_v34, 0.0  ;;  %151 = vadd.xlane.f32.xlu0 %v150_v36 }
  0x97   :  { %157 = vadd.xlane.f32.xlu1 %v156_v37  ;;  %v125_v39 = vld [vmem:[#allocation2 + $0x20] sm:$0x3] }
  0x98   :  { %v134_v41 = vadd.f32 %v339_v19, %v125_v39  ;;  %v122_v43 = vld [vmem:[#allocation2 + $0x8] sm:$0xff] }
  0x99   :  { %v124_v44 = vld [vmem:[#allocation2 + $0x18] sm:$0xff]  ;;  %v131_v45 = vadd.f32 %v339_v19, %v122_v43 }
  0x9a   :  { %v149_v46 = vadd.f32 %v144_v38, %v134_v41  ;;  %v133_v47 = vadd.f32 %v339_v19, %v124_v44 }
  0x9b   :  { %v146_v48 = vadd.f32 %v327_v40, %v131_v45 }
  0x9c   :  { %v162_v49 = vsel %vm33_vm1, %v149_v46, 0.0  ;;  %v148_v50 = vadd.f32 %v331_v42, %v133_v47 }
  0x9d   :  { %163 = vadd.xlane.f32.xlu2 %v162_v49  ;;  %v153_v51 = vsel %vm28_vm0, %v146_v48, 0.0 }
  0x9e   :  { %v159_v52 = vsel %vm28_vm0, %v148_v50, 0.0  ;;  %154 = vadd.xlane.f32.xlu0 %v153_v51 }
  0x9f   :  { %160 = vadd.xlane.f32.xlu1 %v159_v52 }
 0x109   :  { %v152_v60 = vpop.xlane.xlu0 %151 }
 0x10a   :  { %v158_v61 = vpop.xlane.xlu1 %157  ;;  %v172_v62 = vmul.f32 %v171_v59, %v152_v60 }
 0x10b   :  { %v174_v63 = vmul.f32 %v171_v59, %v158_v61 }
 0x10c   :  { %v436_v0 = vsub.f32 %v145_v32, %v172_v62 }
 0x10d   :  { %v438_v1 = vsub.f32 %v147_v34, %v174_v63 }
 0x10e   :  { %v182_v2 = vmul.f32 %v436_v0, %v436_v0 }
 0x10f   :  { %v184_v3 = vmul.f32 %v438_v1, %v438_v1 }
 0x110   :  { %v187_v4 = vsel %vm28_vm0, %v182_v2, 0.0  ;;  %v164_v5 = vpop.xlane.xlu2 %163 }
 0x111   :  { %v193_v6 = vsel %vm28_vm0, %v184_v3, 0.0  ;;  %188 = vadd.xlane.f32.xlu2 %v187_v4  ;;  %v155_v7 = vpop.xlane.xlu0 %154  ;;  %v176_v11 = vmul.f32 %v171_v59, %v164_v5 }
 0x112   :  { %194 = vadd.xlane.f32.xlu1 %v193_v6  ;;  %v161_v8 = vpop.xlane.xlu1 %160  ;;  %v173_v9 = vmul.f32 %v171_v59, %v155_v7 }
 0x113   :  { %v175_v10 = vmul.f32 %v171_v59, %v161_v8  ;;  %v454_v16 = vsub.f32 %v149_v46, %v176_v11 }
 0x114   :  { %v446_v12 = vsub.f32 %v146_v48, %v173_v9 }
 0x115   :  { %v448_v13 = vsub.f32 %v148_v50, %v175_v10  ;;  %v186_v19 = vmul.f32 %v454_v16, %v454_v16  ;;  %v340_v50 = vld [vmem:[%s495_s4] ss:$0 sm:$0xff] }
 0x116   :  { %v183_v14 = vmul.f32 %v446_v12, %v446_v12 }
 0x117   :  { %v185_v15 = vmul.f32 %v448_v13, %v448_v13  ;;  %v199_v20 = vsel %vm33_vm1, %v186_v19, 0.0 }
 0x118   :  { %v190_v17 = vsel %vm28_vm0, %v183_v14, 0.0 }
 0x119   :  { %v196_v18 = vsel %vm28_vm0, %v185_v15, 0.0  ;;  %191 = vadd.xlane.f32.xlu0 %v190_v17 }
 0x11a   :  { %197 = vadd.xlane.f32.xlu2 %v196_v18 }
 0x121   :  { %200 = vadd.xlane.f32.xlu0 %v199_v20 }
 0x184   :  { %v189_v21 = vpop.xlane.xlu2 %188 }
 0x185   :  { %v195_v22 = vpop.xlane.xlu1 %194  ;;  %v202_v23 = vmul.f32 %v189_v21, %v171_v59 }
 0x186   :  { %v204_v24 = vmul.f32 %v195_v22, %v171_v59 }
 0x187   :  { %v207_v25 = vadd.f32 1e-05, %v202_v23 }
 0x188   :  { %v209_v26 = vadd.f32 1e-05, %v204_v24 }
 0x189   :  { %344 = vrsqrt.f32 %v207_v25  ;;  %vm218_vm5 = vweird.f32 %v207_v25 }
 0x18a   :  { %346 = vrsqrt.f32 %v209_v26  ;;  %vm238_vm6 = vweird.f32 %v209_v26 }
 0x18c   :  { %v192_v27 = vpop.xlane.xlu0 %191 }
 0x18d   :  { %v198_v28 = vpop.xlane.xlu2 %197  ;;  %v203_v29 = vmul.f32 %v192_v27, %v171_v59 }
 0x18e   :  { %v205_v30 = vmul.f32 %v198_v28, %v171_v59 }
 0x18f   :  { %v345_v31 = vpop.eup %344  ;;  %v208_v32 = vadd.f32 1e-05, %v203_v29 }
 0x190   :  { %v347_v33 = vpop.eup %346  ;;  %v213_v34 = vmul.f32 %v345_v31, %v207_v25  ;;  %v210_v35 = vadd.f32 1e-05, %v205_v30  ;;  %vm219_vm3 = vweird.f32 %v345_v31 }
 0x191   :  { %v233_v36 = vmul.f32 %v347_v33, %v209_v26  ;;  %348 = vrsqrt.f32 %v208_v32  ;;  %vm239_vm4 = vweird.f32 %v347_v33  ;;  %vm220_vm7 = vmor %vm218_vm5, %vm219_vm3  ;;  %vm228_vm12 = vweird.f32 %v208_v32 }
 0x192   :  { %v214_v37 = vmul.f32 %v345_v31, %v213_v34  ;;  %350 = vrsqrt.f32 %v210_v35  ;;  %vm240_vm8 = vmor %vm238_vm6, %vm239_vm4  ;;  %vm248_vm13 = vweird.f32 %v210_v35  ;;  %vm295_vm3 = vcmask 253952  }
 0x193   :  { %v234_v38 = vmul.f32 %v347_v33, %v233_v36 }
 0x194   :  { %v215_v39 = vmul.f32 0.5, %v214_v37  ;;  %v201_v40 = vpop.xlane.xlu0 %200 }
 0x195   :  { %v235_v41 = vmul.f32 0.5, %v234_v38  ;;  %v206_v42 = vmul.f32 %v201_v40, %v171_v59 }
 0x196   :  { %v216_v43 = vsub.f32 1.5, %v215_v39 }
 0x197   :  { %v349_v44 = vpop.eup %348  ;;  %v236_v45 = vsub.f32 1.5, %v235_v41  ;;  %v211_v46 = vadd.f32 1e-05, %v206_v42 }
 0x198   :  { %v351_v47 = vpop.eup %350  ;;  %v217_v48 = vmul.f32 %v345_v31, %v216_v43  ;;  %v223_v49 = vmul.f32 %v349_v44, %v208_v32  ;;  %vm229_vm9 = vweird.f32 %v349_v44 }
 0x199   :  { %v237_v51 = vmul.f32 %v347_v33, %v236_v45  ;;  %v243_v52 = vmul.f32 %v351_v47, %v210_v35  ;;  %352 = vrsqrt.f32 %v211_v46  ;;  %vm249_vm11 = vweird.f32 %v351_v47  ;;  %vm230_vm14 = vmor %vm228_vm12, %vm229_vm9 }
 0x19a   :  { %v221_v53 = vsel %vm220_vm7, %v345_v31, %v217_v48  ;;  %v224_v54 = vmul.f32 %v349_v44, %v223_v49  ;;  %vm250_vm15 = vmor %vm248_vm13, %vm249_vm11  ;;  %vm258_vm1 = vweird.f32 %v211_v46 }
 0x19b   :  { %v241_v56 = vsel %vm240_vm8, %v347_v33, %v237_v51  ;;  %v262_v57 = vmul.f32 %v221_v53, %v436_v0  ;;  %v244_v58 = vmul.f32 %v351_v47, %v243_v52 }
 0x19c   :  { %v264_v59 = vmul.f32 %v241_v56, %v438_v1  ;;  %v225_v60 = vmul.f32 0.5, %v224_v54 }
 0x19d   :  { %v271_v61 = vmul.f32 %v340_v50, %v262_v57  ;;  %v245_v62 = vmul.f32 0.5, %v244_v58 }
 0x19e   :  { %v273_v63 = vmul.f32 %v340_v50, %v264_v59  ;;  %v226_v2 = vsub.f32 1.5, %v225_v60 }
 0x19f   :  { %v353_v3 = vpop.eup %352  ;;  %v280_v4 = vadd.f32 %v341_v55, %v271_v61  ;;  %v246_v5 = vsub.f32 1.5, %v245_v62 }
 0x1a0   :  { %v282_v6 = vadd.f32 %v341_v55, %v273_v63  ;;  %v227_v7 = vmul.f32 %v349_v44, %v226_v2  ;;  %v253_v8 = vmul.f32 %v353_v3, %v211_v46  ;;  %vm259_vm0 = vweird.f32 %v353_v3 }
 0x1a1   :  { %v285_v9 = vpack.c.bf16 %v280_v4, %v280_v4  ;;  %v247_v0 = vmul.f32 %v351_v47, %v246_v5  ;;  %vm260_vm2 = vmor %vm258_vm1, %vm259_vm0 }
 0x1a2   :  { %v287_v1 = vpack.c.bf16 %v282_v6, %v282_v6  ;;  %v231_v10 = vsel %vm230_vm14, %v349_v44, %v227_v7  ;;  %v254_v11 = vmul.f32 %v353_v3, %v253_v8 }
 0x1a3   :  { %291 = vst.msk [vmem:[%s497_s6] sm:$0xf] %vm290_vm10, %v285_v9  ;;  %v251_v14 = vsel %vm250_vm15, %v351_v47, %v247_v0  ;;  %v263_v15 = vmul.f32 %v231_v10, %v446_v12 }
 0x1a4   :  { %293 = vst.msk [vmem:[%s497_s6 + $0x8] sm:$0xf] %vm290_vm10, %v287_v1  ;;  %v265_v17 = vmul.f32 %v251_v14, %v448_v13  ;;  %v255_v18 = vmul.f32 0.5, %v254_v11 }
 0x1a5   :  { %v272_v19 = vmul.f32 %v340_v50, %v263_v15 }
 0x1a6   :  { %v274_v20 = vmul.f32 %v340_v50, %v265_v17  ;;  %v256_v21 = vsub.f32 1.5, %v255_v18 }
 0x1a7   :  { %v281_v22 = vadd.f32 %v341_v55, %v272_v19 }
 0x1a8   :  { %v283_v23 = vadd.f32 %v341_v55, %v274_v20  ;;  %v257_v24 = vmul.f32 %v353_v3, %v256_v21 }
 0x1a9   :  { %v286_v25 = vpack.c.bf16 %v281_v22, %v281_v22 }
 0x1aa   :  { %v288_v26 = vpack.c.bf16 %v283_v23, %v283_v23  ;;  %v261_v12 = vsel %vm260_vm2, %v353_v3, %v257_v24 }
 0x1ab   :  { %292 = vst.msk [vmem:[%s497_s6 + $0x4] sm:$0xf] %vm290_vm10, %v286_v25  ;;  %v266_v13 = vmul.f32 %v261_v12, %v454_v16 }
 0x1ac   :  { %294 = vst.msk [vmem:[%s497_s6 + $0xc] sm:$0xf] %vm290_vm10, %v288_v26 }
 0x1ad   :  { %v275_v27 = vmul.f32 %v340_v50, %v266_v13 }
 0x1af   :  { %v284_v28 = vadd.f32 %v341_v55, %v275_v27 }
 0x1b1   :  { %v289_v29 = vpack.c.bf16 %v284_v28, %v284_v28 }
 0x1b3   :  { %296 = vst.msk [vmem:[%s497_s6 + $0x10] sm:$0x1] %vm295_vm3, %v289_v29 }

// kernel: vit_forward.13
= control target key start
LH: loop header
LB: loop body
LE: loop exit
PB: predicated region body
PF: predicated region fallthrough
CT: control target
= control target key end

     0   :  { %s863_s6 = smov 0   ;;  %s1026_s0 = inlined_call_operand.vmem [shape: bf16[2,17,96], index: 0, kind: input, shape index: {}]   ;;  %s1027_s1 = inlined_call_operand.vmem [shape: bf16[2,17,32], index: 1, kind: output, shape index: {}]  }
   0x1 LB: > { %s698_s7 = sadd.s32 4294967295, %s836_s6   ;;  %p702_p0 = scmp.ge.s32.totalorder %s836_s6, 1  ;;  %s836_s6 = sphi %s863_s6, %s11_s6  }
   0x2   : > { %p87_p1 = scmp.lt.s32.totalorder %s836_s6, 3 }
   0x4   : > { %p88_p2 = pnand %p702_p0, %p87_p1 }
   0x5   : > { %p107_p3 = scmp.lt.s32.totalorder (!%p88_p2), %s698_s7, 1  ;;  %s838_s12 = smov (!%p88_p2), 88  }
   0x6   : > { %91 = sbr.rel (%p88_p2) target bundleno = 1075 (0x433), region = 24  ;;  %s839_s13 = smov (!%p88_p2), 96  }
   0x7   : > { %s840_s14 = smov (!%p88_p2), 64   ;;  %s841_s15 = smov (!%p88_p2), 120  }
   0x8   : > { %s842_s16 = smov (!%p88_p2), 80   ;;  %s843_s17 = smov (!%p88_p2), 72  }
   0x9   : > { %s844_s18 = smov (!%p88_p2), 112   ;;  %s845_s19 = smov (!%p88_p2), 104  }
   0xa   : > { %s847_s20 = smov (!%p88_p2), 56   ;;  %s848_s21 = smov (!%p88_p2), 40  }
   0xb   : > { %s1029_s7 = smov (!%p107_p3, %s698_s7), 1  ;;  %vm133_vm0 = vcmask 64512   ;;  %vm164_vm1 = vcmask 138240   ;;  %vm206_vm2 = vcmask 1040384   ;;  %v846_v30 = vmov 0   ;;  %s849_s22 = smov 48  }
   0xc   : > { %s743_s8 = smul.u32 12, %s1029_s7  ;;  %v920_v31 = vsel %vm206_vm2, 65535, %v846_v30  ;;  %vm171_vm3 = vcmask 131072   ;;  %s850_s23 = smov 8   ;;  %vm623_vm4 = vcmask 130048   ;;  %vm627_vm5 = vcmask 195584  }
   0xd   : > { %s851_s24 = smov 16   ;;  %s852_s25 = smov 24   ;;  %vm637_vm6 = vcmask 253952   ;;  %vm638_vm7 = vsmask.f32 256  ;;  %vm634_vm8 = vcmask 257024  }
   0xe   : > { %s879_s11 = scalar_lea.vmem %s1026_s0, %s743_s8  ;;  %s116_s28 = scalar_lea.vmem %s1027_s1, %s743_s8  ;;  %vm639_vm9 = vmand %vm637_vm6, %vm638_vm7 }
   0xf   : > { %v120_v0 = vld [vmem:[%s879_s11 + $0x8] sm:$0x1]  ;;  %v884_v4 = vld [vmem:[%s879_s11] sm:$0xff] }
  0x10   : > { %v238_v1 = vld [vmem:[%s879_s11 + $0x8] sm:$0x1]  ;;  %v126_v2 = vunpack.c.l.b16 %v120_v0  ;;  %251 = vrot.lane.b32.xlu2 %v884_v4, %s838_s12  ;;  %v739_v7 = vld [vmem:[%s879_s11] sm:$0xff] }
  0x11   : > { %v244_v3 = vunpack.c.l.b16 %v238_v1  ;;  %v354_v11 = vld [vmem:[%s879_s11 + $0x8] sm:$0x1]  ;;  %v909_v24 = vld [vmem:[%s879_s11] sm:$0xff] }
  0x12   : > { %v128_v5 = vpack.c.b16 %v126_v2, %v126_v2  ;;  %v360_v13 = vunpack.c.l.b16 %v354_v11  ;;  %v470_v14 = vld [vmem:[%s879_s11 + $0x8] sm:$0x1]  ;;  %v913_v25 = vld [vmem:[%s879_s11] sm:$0xff] }
  0x13   : > { %v886_v6 = vpack.c.b16 %v244_v3, %v244_v3  ;;  %v476_v17 = vunpack.c.l.b16 %v470_v14 }
  0x14   : > { %131 = vrot.lane.b32.xlu0 %v128_v5, %s839_s13  ;;  %v897_v15 = vpack.c.b16 %v360_v13, %v360_v13 }
  0x15   : > { %253 = vrot.lane.b32.xlu1 %v886_v6, %s838_s12  ;;  %v902_v21 = vpack.c.b16 %v476_v17, %v476_v17 }
  0x1c   : > { %129 = vrot.lane.b32.xlu0 %v739_v7, %s839_s13 }
  0x24   : > { %197 = vrot.lane.b32.xlu0 %v128_v5, %s840_s14 }
  0x2c   : > { %247 = vrot.lane.b32.xlu0 %v884_v4, %s841_s15 }
  0x34   : > { %195 = vrot.lane.b32.xlu0 %v739_v7, %s840_s14 }
  0x3c   : > { %369 = vrot.lane.b32.xlu0 %v897_v15, %s842_s16 }
  0x44   : > { %485 = vrot.lane.b32.xlu0 %v902_v21, %s843_s17 }
  0x4c   : > { %367 = vrot.lane.b32.xlu0 %v909_v24, %s842_s16 }
  0x54   : > { %483 = vrot.lane.b32.xlu0 %v913_v25, %s843_s17 }
  0x5c   : > { %363 = vrot.lane.b32.xlu0 %v909_v24, %s844_s18 }
  0x64   : > { %481 = vrot.lane.b32.xlu0 %v902_v21, %s845_s19 }
  0x6a   : > { %v252_v16 = vpop.permute.xlu2 %251 }
  0x6b   : > { %v262_v19 = vsel %vm133_vm0, %v252_v16, 0 }
  0x86   : > { %v132_v8 = vpop.permute.xlu0 %131 }
  0x87   : > { %v144_v9 = vsel %vm133_vm0, %v132_v8, 0  ;;  %v254_v10 = vpop.permute.xlu1 %253 }
  0x88   : > { %152 = vmatpush.bf16.xpose.msra.mxu0 %v144_v9  ;;  %v265_v12 = vsel %vm133_vm0, %v254_v10, 0 }
  0x89   : > { %273 = vmatpush.bf16.xpose.msra.mxu2 %v265_v12 }
  0x8e   : > { %v130_v18 = vpop.permute.xlu0 %129 }
  0x8f   : > { %v141_v20 = vsel %vm133_vm0, %v130_v18, 0 }
  0x90   : > { %153 = vmatpush.bf16.xpose.msra.mxu0 %v141_v20 }
  0x91   : > { %274 = vmatpush.bf16.xpose.msra.mxu2 %v262_v19 }
  0x96   : > { %v198_v22 = vpop.permute.xlu0 %197 }
  0x97   : > { %709 = vmatmul.msk.bf16.vlgmr.msra.gmra.mxu0 %vm133_vm0, %v739_v7  ;;  %v210_v32 = vand.u32 %v920_v31, %v198_v22 }
  0x99   : > { %218 = vmatpush.bf16.msra.mxu1 %v210_v32 }
  0x9e   : > { %v248_v23 = vpop.permute.xlu0 %247 }
  0x9f   : > { %717 = vmatmul.msk.bf16.vlgmr.msra.gmra.mxu2 %vm133_vm0, %v248_v23 }
  0xa6   : > { %v196_v33 = vpop.permute.xlu0 %195 }
  0xa7   : > { %710 = vmatmul.msk.bf16.gmra.mxu0 %vm133_vm0, %v128_v5  ;;  %219 = vmatpush.bf16.msra.mxu1 %v196_v33 }
  0xae   : > { %v370_v40 = vpop.permute.xlu0 %369 }
  0xaf   : > { %v381_v41 = vsel %vm133_vm0, %v370_v40, 0 }
  0xb0   : > { %389 = vmatpush.bf16.xpose.msrb.mxu1 %v381_v41 }
  0xb6   : > { %v486_v42 = vpop.permute.xlu0 %485 }
  0xb7   : > { %v497_v43 = vsel %vm133_vm0, %v486_v42, 0 }
  0xb8   : > { %505 = vmatpush.bf16.xpose.msrb.mxu0 %v497_v43 }
  0xbe   : > { %v368_v45 = vpop.permute.xlu0 %367 }
  0xbf   : > { %v378_v46 = vsel %vm133_vm0, %v368_v45, 0 }
  0xc0   : > { %390 = vmatpush.bf16.xpose.msrb.mxu1 %v378_v46 }
  0xc6   : > { %v484_v47 = vpop.permute.xlu0 %483 }
  0xc7   : > { %v494_v48 = vsel %vm133_vm0, %v484_v47, 0 }
  0xc8   : > { %506 = vmatpush.bf16.xpose.msrb.mxu0 %v494_v48 }
  0xce   : > { %v364_v63 = vpop.permute.xlu0 %363 }
  0xd6   : > { %v482_v2 = vpop.permute.xlu0 %481 }
 0x114   : > { %v155_v26 = vpop.f32.mrf.mxu0 }
 0x115   : > { %v165_v27 = vsel %vm164_vm1, %v155_v26, -inf }
 0x116   : > { %166 = vmax.xlane.f32.xlu1 %v165_v27 }
 0x11c   : > { %v157_v28 = vpop.f32.mrf.mxu0 }
 0x11d   : > { %v168_v29 = vsel %vm164_vm1, %v157_v28, -inf }
 0x11e   : > { %169 = vmax.xlane.f32.xlu2 %v168_v29 }
 0x122   : > { %v276_v37 = vpop.f32.mrf.mxu2 }
 0x123   : > { %v285_v44 = vsel %vm164_vm1, %v276_v37, -inf }
 0x124   : > { %v160_v34 = vpop.f32.mrf.mxu0 }
 0x125   : > { %v172_v35 = vsel %vm171_vm3, %v160_v34, -inf }
 0x126   : > { %173 = vmax.xlane.f32.xlu2 %v172_v35 }
 0x12a   : > { %v278_v38 = vpop.f32.mrf.mxu2 }
 0x12b   : > { %v288_v39 = vsel %vm164_vm1, %v278_v38, -inf }
 0x12c   : > { %v162_v36 = vpop.f32.mrf.mxu0  ;;  %289 = vmax.xlane.f32.xlu0 %v288_v39 }
 0x12f   : > { %249 = vrot.lane.b32.xlu1 %v886_v6, %s841_s15 }
 0x137   : > { %365 = vrot.lane.b32.xlu1 %v897_v15, %s844_s18 }
 0x13e   : > { %479 = vrot.lane.b32.xlu2 %v913_v25, %s845_s19 }
 0x146   : > { %316 = vrot.lane.b32.xlu2 %v886_v6, %s847_s20 }
 0x14e   : > { %314 = vrot.lane.b32.xlu2 %v884_v4, %s847_s20 }
 0x161   : > { %286 = vmax.xlane.f32.xlu1 %v285_v44 }
 0x189   : > { %v167_v49 = vpop.xlane.xlu1 %166 }
 0x18a   : > { %v175_v50 = vsub.f32 %v155_v26, %v167_v49 }
 0x18c   : > { %v178_v51 = vmul.f32 1.442695, %v175_v50 }
 0x18e   : > { %782 = vpow2.f32 %v178_v51 }
 0x191   : > { %v170_v52 = vpop.xlane.xlu2 %169 }
 0x192   : > { %v176_v53 = vsub.f32 %v157_v28, %v170_v52 }
 0x194   : > { %v180_v54 = vmul.f32 1.442695, %v176_v53  ;;  %v936_v56 = vpop.eup %782 }
 0x196   : > { %784 = vpow2.f32 %v180_v54 }
 0x199   : > { %v174_v55 = vpop.xlane.xlu2 %173 }
 0x19a   : > { %v177_v58 = vsub.f32 %v160_v34, %v174_v55 }
 0x19c   : > { %v938_v57 = vpop.eup %784  ;;  %v182_v60 = vmul.f32 1.442695, %v177_v58 }
 0x19d   : > { %v193_v59 = vpack.c.bf16 %v938_v57, %v936_v56 }
 0x19e   : > { %786 = vpow2.f32 %v182_v60 }
 0x19f   : > { %711 = vmatmul.msk.bf16.vlgmr.msra.gmra.mxu1 %vm164_vm1, %v193_v59  ;;  %v290_v7 = vpop.xlane.xlu0 %289 }
 0x1a0   : > { %v295_v8 = vsub.f32 %v278_v38, %v290_v7 }
 0x1a1   : > { %v250_v61 = vpop.permute.xlu1 %249  ;;  %v480_v62 = vpop.permute.xlu2 %479 }
 0x1a2   : > { %718 = vmatmul.msk.bf16.gmra.mxu2 %vm133_vm0, %v250_v61  ;;  %733 = vmatmul.msk.bf16.vlgmr.msrb.gmra.mxu0 %vm133_vm0, %v480_v62  ;;  %v299_v9 = vmul.f32 1.442695, %v295_v8 }
 0x1a4   : > { %v945_v0 = vpop.eup %786  ;;  %788 = vpow2.f32 %v299_v9 }
 0x1a5   : > { %v194_v1 = vpack.c.bf16 %v945_v0, %v945_v0 }
 0x1a9   : > { %v317_v3 = vpop.permute.xlu2 %316  ;;  %v366_v6 = vpop.permute.xlu1 %365 }
 0x1aa   : > { %v326_v4 = vand.u32 %v317_v3, %v920_v31  ;;  %v789_v13 = vpop.eup %788  ;;  %v187_v3 = vsel %vm164_vm1, %v938_v57, 0.0 }
 0x1ab   : > { %v306_v54 = vsel %vm164_vm1, %v789_v13, 0.0 }
 0x1ac   : > { %334 = vmatpush.bf16.msra.mxu3 %v326_v4 }
 0x1af   : > { %712 = vmatmul.msk.bf16.gmra.mxu1 %vm164_vm1, %v194_v1  ;;  %v184_v1 = vsel %vm164_vm1, %v936_v56, 0.0 }
 0x1b1   : > { %v315_v5 = vpop.permute.xlu2 %314 }
 0x1b2   : > { %734 = vmatmul.msk.bf16.gmra.mxu0 %vm133_vm0, %v482_v2  ;;  %335 = vmatpush.bf16.msra.mxu3 %v315_v5 }
 0x1bf   : > { %725 = vmatmul.msk.bf16.vlgmr.msrb.gmra.mxu1 %vm133_vm0, %v364_v63 }
 0x1cf   : > { %726 = vmatmul.msk.bf16.gmra.mxu1 %vm133_vm0, %v366_v6 }
 0x1d4   : > { %v287_v10 = vpop.xlane.xlu1 %286 }
 0x1d5   : > { %v294_v11 = vsub.f32 %v276_v37, %v287_v10 }
 0x1d7   : > { %v297_v12 = vmul.f32 1.442695, %v294_v11 }
 0x1d9   : > { %790 = vpow2.f32 %v297_v12 }
 0x1df   : > { %v791_v14 = vpop.eup %790 }
 0x1e0   : > { %v312_v16 = vpack.c.bf16 %v789_v13, %v791_v14 }
 0x1e2   : > { %719 = vmatmul.msk.bf16.vlgmr.msra.gmra.mxu3 %vm164_vm1, %v312_v16 }
 0x21c   : > { %v955_v17 = vpop.f32.mrf.mxu1 }
 0x21f   : > { %v508_v18 = vpop.f32.mrf.mxu0 }
 0x220   : > { %v517_v19 = vsel %vm164_vm1, %v508_v18, -inf }
 0x221   : > { %518 = vmax.xlane.f32.xlu1 %v517_v19 }
 0x224   : > { %v958_v20 = vpop.f32.mrf.mxu1 }
 0x225   : > { %v281_v22 = vpop.f32.mrf.mxu2 }
 0x226   : > { %v291_v23 = vsel %vm171_vm3, %v281_v22, -inf }
 0x227   : > { %292 = vmax.xlane.f32.xlu2 %v291_v23  ;;  %v510_v26 = vpop.f32.mrf.mxu0 }
 0x228   : > { %v520_v27 = vsel %vm164_vm1, %v510_v26, -inf }
 0x229   : > { %521 = vmax.xlane.f32.xlu0 %v520_v27 }
 0x22c   : > { %v962_v28 = vpop.f32.mrf.mxu1 }
 0x22d   : > { %v283_v29 = vpop.f32.mrf.mxu2 }
 0x22f   : > { %v972_v38 = vpop.f32.mrf.mxu0 }
 0x230   : > { %v523_v47 = vsel %vm171_vm3, %v972_v38, -inf }
 0x234   : > { %v228_v30 = vpop.f32.mrf.mxu1 }
 0x237   : > { %v515_v39 = vpop.f32.mrf.mxu0 }
 0x23c   : > { %v392_v32 = vpop.f32.mrf.mxu1 }
 0x23d   : > { %548 = vrot.lane.b32.xlu0 %v902_v21, %s848_s21  ;;  %v401_v33 = vsel %vm164_vm1, %v392_v32, -inf }
 0x23e   : > { %402 = vmax.xlane.f32.xlu1 %v401_v33 }
 0x23f   : > { %430 = vrot.lane.b32.xlu2 %v909_v24, %s849_s22  ;;  %v303_v24 = vsel %vm164_vm1, %v791_v14, 0.0 }
 0x244   : > { %v394_v34 = vpop.f32.mrf.mxu1 }
 0x245   : > { %v404_v37 = vsel %vm164_vm1, %v394_v34, -inf }
 0x24c   : > { %v968_v35 = vpop.f32.mrf.mxu1 }
 0x24d   : > { %v407_v21 = vsel %vm171_vm3, %v968_v35, -inf }
 0x254   : > { %v399_v36 = vpop.f32.mrf.mxu1 }
 0x257   : > { %432 = vrot.lane.b32.xlu1 %v897_v15, %s849_s22 }
 0x267   : > { %405 = vmax.xlane.f32.xlu0 %v404_v37  ;;  %v190_v37 = vsel %vm171_vm3, %v945_v0, 0.0 }
 0x27b   : > { %546 = vrot.lane.b32.xlu0 %v913_v25, %s848_s21 }
 0x281   : > { %408 = vmax.xlane.f32.xlu1 %v407_v21 }
 0x289   : > { %304 = vadd.xlane.f32.xlu1 %v303_v24 }
 0x294   : > { %v519_v40 = vpop.xlane.xlu1 %518 }
 0x295   : > { %v526_v15 = vsub.f32 %v508_v18, %v519_v40 }
 0x297   : > { %v529_v43 = vmul.f32 1.442695, %v526_v15 }
 0x29a   : > { %v293_v41 = vpop.xlane.xlu2 %292 }
 0x29b   : > { %v296_v42 = vsub.f32 %v281_v22, %v293_v41  ;;  %v337_v22 = vpop.f32.mrf.mxu3 }
 0x29c   : > { %v522_v44 = vpop.xlane.xlu0 %521 }
 0x29d   : > { %v301_v45 = vmul.f32 1.442695, %v296_v42  ;;  %v527_v46 = vsub.f32 %v510_v26, %v522_v44 }
 0x29f   : > { %792 = vpow2.f32 %v301_v45  ;;  %v531_v25 = vmul.f32 1.442695, %v527_v46 }
 0x2a0   : > { %794 = vpow2.f32 %v529_v43 }
 0x2a1   : > { %796 = vpow2.f32 %v531_v25 }
 0x2a2   : > { %v431_v7 = vpop.permute.xlu2 %430 }
 0x2a3   : > { %v339_v30 = vpop.f32.mrf.mxu3 }
 0x2a5   : > { %v793_v48 = vpop.eup %792  ;;  %524 = vmax.xlane.f32.xlu0 %v523_v47 }
 0x2a6   : > { %v795_v49 = vpop.eup %794  ;;  %v309_v50 = vsel %vm171_vm3, %v793_v48, 0.0  ;;  %v313_v51 = vpack.c.bf16 %v793_v48, %v793_v48 }
 0x2a7   : > { %v797_v52 = vpop.eup %796  ;;  %310 = vadd.xlane.f32.xlu2 %v309_v50  ;;  %v535_v55 = vsel %vm164_vm1, %v795_v49, 0.0 }
 0x2a8   : > { %720 = vmatmul.msk.bf16.gmra.mxu3 %vm164_vm1, %v313_v51  ;;  %v544_v53 = vpack.c.bf16 %v797_v52, %v795_v49  ;;  %v538_v63 = vsel %vm164_vm1, %v797_v52, 0.0 }
 0x2ad   : > { %307 = vadd.xlane.f32.xlu0 %v306_v54 }
 0x2af   : > { %536 = vadd.xlane.f32.xlu2 %v535_v55  ;;  %v549_v58 = vpop.permute.xlu0 %548 }
 0x2b0   : > { %v558_v59 = vand.u32 %v549_v58, %v920_v31 }
 0x2b1   : > { %v403_v60 = vpop.xlane.xlu1 %402 }
 0x2b2   : > { %v410_v61 = vsub.f32 %v392_v32, %v403_v60  ;;  %566 = vmatpush.bf16.msrb.mxu2 %v558_v59 }
 0x2b4   : > { %v413_v62 = vmul.f32 1.442695, %v410_v61 }
 0x2b5   : > { %539 = vadd.xlane.f32.xlu0 %v538_v63 }
 0x2b6   : > { %798 = vpow2.f32 %v413_v62 }
 0x2b7   : > { %185 = vadd.xlane.f32.xlu2 %v184_v1 }
 0x2bc   : > { %v799_v2 = vpop.eup %798 }
 0x2bd   : > { %188 = vadd.xlane.f32.xlu0 %v187_v3  ;;  %v419_v4 = vsel %vm164_vm1, %v799_v2, 0.0 }
 0x2bf   : > { %420 = vadd.xlane.f32.xlu2 %v419_v4 }
 0x2c9   : > { %v433_v5 = vpop.permute.xlu1 %432 }
 0x2ca   : > { %v442_v6 = vand.u32 %v433_v5, %v920_v31 }
 0x2cc   : > { %450 = vmatpush.bf16.msrb.mxu3 %v442_v6 }
 0x2d0   : > { %451 = vmatpush.bf16.msrb.mxu3 %v431_v7 }
 0x2da   : > { %v406_v8 = vpop.xlane.xlu0 %405 }
 0x2db   : > { %v411_v9 = vsub.f32 %v394_v34, %v406_v8 }
 0x2dd   : > { %v415_v10 = vmul.f32 1.442695, %v411_v9 }
 0x2df   : > { %800 = vpow2.f32 %v415_v10 }
 0x2e5   : > { %v801_v56 = vpop.eup %800 }
 0x2e6   : > { %v422_v11 = vsel %vm164_vm1, %v801_v56, 0.0  ;;  %v428_v12 = vpack.c.bf16 %v801_v56, %v799_v2 }
 0x2e7   : > { %423 = vadd.xlane.f32.xlu0 %v422_v11 }
 0x2e8   : > { %727 = vmatmul.msk.bf16.vlgmr.msrb.gmra.mxu3 %vm164_vm1, %v428_v12 }
 0x2ed   : > { %v547_v57 = vpop.permute.xlu0 %546 }
 0x2ee   : > { %567 = vmatpush.bf16.msrb.mxu2 %v547_v57 }
 0x2f1   : > { %735 = vmatmul.msk.bf16.vlgmr.msrb.gmra.mxu2 %vm164_vm1, %v544_v53 }
 0x2f4   : > { %v409_v13 = vpop.xlane.xlu1 %408 }
 0x2f5   : > { %v412_v31 = vsub.f32 %v968_v35, %v409_v13 }
 0x2f7   : > { %v417_v14 = vmul.f32 1.442695, %v412_v31 }
 0x2f9   : > { %802 = vpow2.f32 %v417_v14 }
 0x2fc   : > { %v305_v39 = vpop.xlane.xlu1 %304 }
 0x2ff   : > { %v803_v16 = vpop.eup %802 }
 0x300   : > { %v429_v18 = vpack.c.bf16 %v803_v16, %v803_v16  ;;  %v425_v21 = vsel %vm171_vm3, %v803_v16, 0.0 }
 0x302   : > { %728 = vmatmul.msk.bf16.gmra.mxu3 %vm164_vm1, %v429_v18 }
 0x318   : > { %v525_v19 = vpop.xlane.xlu0 %524 }
 0x319   : > { %v528_v23 = vsub.f32 %v972_v38, %v525_v19 }
 0x31a   : > { %v311_v24 = vpop.xlane.xlu2 %310 }
 0x31b   : > { %v533_v26 = vmul.f32 1.442695, %v528_v23 }
 0x31d   : > { %804 = vpow2.f32 %v533_v26 }
 0x320   : > { %v308_v27 = vpop.xlane.xlu0 %307 }
 0x321   : > { %806 = vrcp.f32 %v308_v27 }
 0x322   : > { %808 = vrcp.f32 %v305_v39  ;;  %v537_v51 = vpop.xlane.xlu2 %536 }
 0x323   : > { %v805_v29 = vpop.eup %804  ;;  %810 = vrcp.f32 %v311_v24 }
 0x324   : > { %v541_v32 = vsel %vm171_vm3, %v805_v29, 0.0  ;;  %v545_v33 = vpack.c.bf16 %v805_v29, %v805_v29 }
 0x325   : > { %542 = vadd.xlane.f32.xlu1 %v541_v32 }
 0x326   : > { %736 = vmatmul.msk.bf16.gmra.mxu2 %vm164_vm1, %v545_v33 }
 0x327   : > { %v807_v34 = vpop.eup %806 }
 0x328   : > { %v350_v35 = vmul.f32 %v807_v34, %v339_v30  ;;  %v809_v40 = vpop.eup %808  ;;  %v540_v44 = vpop.xlane.xlu0 %539  ;;  %v640_v34 = vld [vmem:[%s116_s28 + $0x8] sm:$0x1] }
 0x329   : > { %v811_v15 = vpop.eup %810  ;;  %v349_v42 = vmul.f32 %v809_v40, %v337_v22 }
 0x32a   : > { %589 = vrot.lane.b32.xlu2 %v350_v35, %s850_s23  ;;  %v186_v54 = vpop.xlane.xlu2 %185 }
 0x32b   : > { %v342_v36 = vpop.f32.mrf.mxu3 }
 0x32c   : > { %v351_v41 = vmul.f32 %v811_v15, %v342_v36 }
 0x32d   : > { %191 = vadd.xlane.f32.xlu1 %v190_v37 }
 0x32e   : > { %v767_v43 = vpack.i.bf16 %v349_v42, %v351_v41 }
 0x330   : > { %v189_v45 = vpop.xlane.xlu0 %188 }
 0x332   : > { %v421_v59 = vpop.xlane.xlu2 %420 }
 0x333   : > { %v344_v38 = vpop.f32.mrf.mxu3 }
 0x335   : > { %426 = vadd.xlane.f32.xlu1 %v425_v21 }
 0x34e   : > { %768 = vrot.lane.b32.xlu1 %v767_v43, %s850_s23 }
 0x35a   : > { %v424_v46 = vpop.xlane.xlu0 %423 }
 0x35b   : > { %812 = vrcp.f32 %v424_v46 }
 0x35c   : > { %814 = vrcp.f32 %v537_v51 }
 0x361   : > { %v813_v0 = vpop.eup %812 }
 0x362   : > { %v815_v60 = vpop.eup %814 }
 0x36b   : > { %v453_v25 = vpop.f32.mrf.mxu3 }
 0x373   : > { %v455_v47 = vpop.f32.mrf.mxu3 }
 0x374   : > { %v466_v48 = vmul.f32 %v813_v0, %v455_v47  ;;  %v569_v52 = vpop.f32.mrf.mxu2 }
 0x375   : > { %v581_v1 = vmul.f32 %v815_v60, %v569_v52 }
 0x376   : > { %601 = vrot.lane.b32.xlu1 %v466_v48, %s851_s24 }
 0x37c   : > { %v571_v58 = vpop.f32.mrf.mxu2 }
 0x384   : > { %v590_v11 = vpop.permute.xlu2 %589 }
 0x385   : > { %v458_v49 = vpop.f32.mrf.mxu3 }
 0x38d   : > { %v460_v50 = vpop.f32.mrf.mxu3 }
 0x398   : > { %v543_v53 = vpop.xlane.xlu1 %542 }
 0x399   : > { %816 = vrcp.f32 %v543_v53 }
 0x39a   : > { %818 = vrcp.f32 %v421_v59 }
 0x39f   : > { %v817_v62 = vpop.eup %816 }
 0x3a0   : > { %v192_v55 = vpop.xlane.xlu1 %191  ;;  %v819_v4 = vpop.eup %818 }
 0x3a1   : > { %v465_v6 = vmul.f32 %v819_v4, %v453_v25 }
 0x3a8   : > { %v427_v61 = vpop.xlane.xlu1 %426 }
 0x3a9   : > { %820 = vrcp.f32 %v427_v61  ;;  %v574_v63 = vpop.f32.mrf.mxu2 }
 0x3aa   : > { %v583_v2 = vmul.f32 %v817_v62, %v574_v63  ;;  %822 = vrcp.f32 %v540_v44 }
 0x3ab   : > { %824 = vrcp.f32 %v186_v54 }
 0x3ac   : > { %v777_v3 = vpack.i.bf16 %v581_v1, %v583_v2  ;;  %826 = vrcp.f32 %v192_v55 }
 0x3ad   : > { %828 = vrcp.f32 %v189_v45 }
 0x3ae   : > { %778 = vrot.lane.b32.xlu2 %v777_v3, %s852_s25 }
 0x3af   : > { %v821_v5 = vpop.eup %820 }
 0x3b0   : > { %v467_v7 = vmul.f32 %v821_v5, %v458_v49  ;;  %v823_v10 = vpop.eup %822 }
 0x3b1   : > { %v576_v8 = vpop.f32.mrf.mxu2  ;;  %v582_v56 = vmul.f32 %v823_v10, %v571_v58  ;;  %v825_v57 = vpop.eup %824 }
 0x3b2   : > { %v772_v9 = vpack.i.bf16 %v465_v6, %v467_v7  ;;  %v827_v13 = vpop.eup %826  ;;  %v233_v18 = vmul.f32 %v825_v57, %v955_v17 }
 0x3b3   : > { %v235_v19 = vmul.f32 %v827_v13, %v962_v28  ;;  %v829_v27 = vpop.eup %828 }
 0x3b4   : > { %773 = vrot.lane.b32.xlu0 %v772_v9, %s851_s24  ;;  %v234_v37 = vmul.f32 %v829_v27, %v958_v20 }
 0x3b6   : > { %v621_v24 = vsel %vm133_vm0, %v234_v37, %v590_v11 }
 0x3bc   : > { %613 = vrot.lane.b32.xlu0 %v582_v56, %s852_s25 }
 0x3c0   : > { %v769_v12 = vpop.permute.xlu1 %768 }
 0x3c1   : > { %v771_v31 = vunpack.i.h.bf16 %v769_v12  ;;  %v770_v14 = vunpack.i.l.bf16 %v769_v12 }
 0x3c3   : > { %v620_v29 = vsel %vm133_vm0, %v233_v18, %v771_v31  ;;  %v622_v30 = vsel %vm133_vm0, %v235_v19, %v770_v14 }
 0x3e8   : > { %v602_v38 = vpop.permute.xlu1 %601 }
 0x3e9   : > { %v625_v15 = vsel %vm623_vm4, %v621_v24, %v602_v38 }
 0x408   : > { %v779_v16 = vpop.permute.xlu2 %778 }
 0x409   : > { %v781_v17 = vunpack.i.h.bf16 %v779_v16  ;;  %v780_v32 = vunpack.i.l.bf16 %v779_v16 }
 0x426   : > { %v774_v22 = vpop.permute.xlu0 %773 }
 0x427   : > { %v776_v23 = vunpack.i.h.bf16 %v774_v22  ;;  %v775_v26 = vunpack.i.l.bf16 %v774_v22 }
 0x429   : > { %v624_v28 = vsel %vm623_vm4, %v620_v29, %v776_v23  ;;  %v626_v33 = vsel %vm623_vm4, %v622_v30, %v775_v26 }
 0x42a   : > { %v628_v35 = vsel %vm627_vm5, %v624_v28, %v781_v17  ;;  %v630_v36 = vsel %vm627_vm5, %v626_v33, %v780_v32 }
 0x42b   : > { %v631_v21 = vpack.c.bf16 %v628_v35, %v628_v35  ;;  %v633_v39 = vpack.c.bf16 %v630_v36, %v630_v36 }
 0x42d   : > { %635 = vst.msk [vmem:[%s116_s28] sm:$0xf] %vm634_vm8, %v631_v21  ;;  %v641_v40 = vsel %vm639_vm9, %v633_v39, %v640_v34 }
 0x42e   : > { %v614_v41 = vpop.permute.xlu0 %613  ;;  %642 = vst [vmem:[%s116_s28 + $0x8] sm:$0x1] %v641_v40 }
 0x42f   : > { %v629_v42 = vsel %vm627_vm5, %v625_v15, %v614_v41 }
 0x430   : > { %v632_v43 = vpack.c.bf16 %v629_v42, %v629_v42 }
 0x432   : > { %636 = vst.msk [vmem:[%s116_s28 + $0x4] sm:$0xf] %vm634_vm8, %v632_v43 }
 0x433 PF: > { %s11_s6 = sadd.s32 1, %s836_s6  }
 0x434   : > { %p8_p4 = scmp.ge.s32.totalorder %s11_s6, 4  }
 0x436   :  { %10 = sbr.rel (!%p8_p4) target bundleno = 1 (0x1), region = 54 }

// kernel: vit_forward.15
= control target key start
LH: loop header
LB: loop body
LE: loop exit
PB: predicated region body
PF: predicated region fallthrough
CT: control target
= control target key end

     0   :  { %vm32_vm0 = vcmask 261120   ;;  %v486_v20 = vmov 0.0   ;;  %vm37_vm1 = vcmask 254976   ;;  %vm378_vm7 = vcmask 257024   ;;  %s677_s1 = inlined_call_operand.vmem [shape: bf16[32,128], index: 1, kind: input, shape index: {}]   ;;  %s678_s2 = inlined_call_operand.vmem [shape: f32[1,128], index: 2, kind: input, shape index: {}]   ;;  %s679_s0 = inlined_call_operand.vmem [shape: bf16[34,32], index: 0, kind: input, shape index: {}]   ;;  %s680_s3 = inlined_call_operand.vmem [shape: bf16[128,32], index: 3, kind: input, shape index: {}]   ;;  %s681_s4 = inlined_call_operand.vmem [shape: f32[1,32], index: 4, kind: input, shape index: {}]   ;;  %s682_s5 = inlined_call_operand.vmem [shape: f32[1,32], index: 5, kind: input, shape index: {}]   ;;  %s683_s6 = inlined_call_operand.vmem [shape: f32[1,32], index: 6, kind: input, shape index: {}]   ;;  %s684_s7 = inlined_call_operand.vmem [shape: bf16[34,32], index: 7, kind: output, shape index: {}]  }
   0x1   :  { %v443_v0 = vld [vmem:[%s677_s1 + $0x8] sm:$0xff]  ;;  %v442_v1 = vld [vmem:[%s677_s1] sm:$0xff]  ;;  %v451_v3 = vld [vmem:[%s680_s3 + $0x38] sm:$0xff]  ;;  %33 = vst.msk [vmem:[#allocation2] sm:$0xff] %vm32_vm0, %v486_v20 }
   0x2   :  { %87 = vmatpush.bf16.msra.mxu0 %v443_v0  ;;  %v440_v2 = vld [vmem:[%s679_s0] sm:$0xff]  ;;  %181 = vmatpush.bf16.msra.mxu1 %v451_v3  ;;  %v450_v4 = vld [vmem:[%s680_s3 + $0x30] sm:$0xff]  ;;  %v449_v5 = vld [vmem:[%s680_s3 + $0x28] sm:$0xff]  ;;  %34 = vst.msk [vmem:[#allocation2 + $0x8] sm:$0xff] %vm32_vm0, %v486_v20 }
   0x3   :  { %452 = vmatpush.bf16.msra.mxu2 %v451_v3  ;;  %453 = vmatpush.bf16.msra.mxu3 %v451_v3  ;;  %v448_v6 = vld [vmem:[%s680_s3 + $0x20] sm:$0xff]  ;;  %v441_v7 = vld [vmem:[%s679_s0 + $0x8] sm:$0xff]  ;;  %v557_v8 = vld [vmem:[%s679_s0 + $0x10] sm:$0x1]  ;;  %35 = vst.msk [vmem:[#allocation2 + $0x10] sm:$0xff] %vm32_vm0, %v486_v20 }
   0x4   :  { %v56_v9 = vunpack.c.l.b16 %v557_v8  ;;  %v447_v11 = vld [vmem:[%s680_s3 + $0x18] sm:$0xff]  ;;  %v446_v12 = vld [vmem:[%s680_s3 + $0x10] sm:$0xff]  ;;  %v445_v13 = vld [vmem:[%s680_s3 + $0x8] sm:$0xff]  ;;  %36 = vst.msk [vmem:[#allocation2 + $0x18] sm:$0xff] %vm32_vm0, %v486_v20 }
   0x5   :  { %v444_v14 = vld [vmem:[%s680_s3] sm:$0xff]  ;;  %38 = vst.msk [vmem:[#allocation2 + $0x20] sm:$0x3] %vm37_vm1, %v486_v20  ;;  %v29_v59 = vld [vmem:[%s679_s0 + $0x8] sm:$0xff]  }
   0x6   :  { %88 = vmatpush.bf16.msra.mxu0 %v442_v1  ;;  %182 = vmatpush.bf16.msra.mxu1 %v450_v4  ;;  %v59_v10 = vpack.c.b16 %v56_v9, %v56_v9  ;;  %v470_v16 = vld [vmem:[%s678_s2] ss:$0 sm:$0xff]  ;;  %v230_v0 = vunpack.c.l.bf16 %v29_v59 }
   0x7   :  { %454 = vmatpush.bf16.msra.mxu2 %v450_v4  ;;  %455 = vmatpush.bf16.msra.mxu3 %v450_v4  ;;  %v27_v40 = vld [vmem:[%s679_s0] sm:$0xff]  }
   0x8   :  { %v109_v36 = vld [vmem:[#allocation2] sm:$0xff]  ;;  %v228_v44 = vunpack.c.l.bf16 %v27_v40  ;;  %v229_v49 = vunpack.c.h.bf16 %v27_v40 }
   0x9   :  { %405 = vmatmul.msk.bf16.vlgmr.msra.gmra.mxu0 %vm32_vm0, %v440_v2  ;;  %v110_v39 = vld [vmem:[#allocation2 + $0x8] sm:$0xff]  ;;  %v471_v41 = vld [vmem:[%s681_s4] ss:$0 sm:$0xff] }
   0xa   :  { %183 = vmatpush.bf16.msra.mxu1 %v449_v5  ;;  %v111_v52 = vld [vmem:[#allocation2 + $0x10] sm:$0xff] }
   0xb   :  { %456 = vmatpush.bf16.msra.mxu2 %v449_v5  ;;  %457 = vmatpush.bf16.msra.mxu3 %v449_v5  ;;  %v112_v57 = vld [vmem:[#allocation2 + $0x18] sm:$0xff] }
   0xc   :  { %v113_v58 = vld [vmem:[#allocation2 + $0x20] sm:$0x3] }
   0xe   :  { %184 = vmatpush.bf16.msra.mxu1 %v448_v6 }
   0xf   :  { %458 = vmatpush.bf16.msra.mxu2 %v448_v6  ;;  %459 = vmatpush.bf16.msra.mxu3 %v448_v6  ;;  %v231_v6 = vunpack.c.h.bf16 %v29_v59 }
  0x12   :  { %185 = vmatpush.bf16.msra.mxu1 %v447_v11 }
  0x13   :  { %460 = vmatpush.bf16.msra.mxu2 %v447_v11  ;;  %461 = vmatpush.bf16.msra.mxu3 %v447_v11 }
  0x16   :  { %186 = vmatpush.bf16.msra.mxu1 %v446_v12 }
  0x17   :  { %462 = vmatpush.bf16.msra.mxu2 %v446_v12  ;;  %463 = vmatpush.bf16.msra.mxu3 %v446_v12 }
  0x19   :  { %406 = vmatmul.msk.bf16.gmra.mxu0 %vm32_vm0, %v441_v7  ;;  %v232_v7 = vunpack.c.l.bf16 %v557_v8 }
  0x1a   :  { %187 = vmatpush.bf16.msra.mxu1 %v445_v13 }
  0x1b   :  { %464 = vmatpush.bf16.msra.mxu2 %v445_v13  ;;  %465 = vmatpush.bf16.msra.mxu3 %v445_v13 }
  0x1e   :  { %188 = vmatpush.bf16.msra.mxu1 %v444_v14 }
  0x1f   :  { %466 = vmatpush.bf16.msra.mxu2 %v444_v14  ;;  %467 = vmatpush.bf16.msra.mxu3 %v444_v14 }
  0x29   :  { %407 = vmatmul.msk.bf16.gmra.mxu0 %vm32_vm0, %v59_v10 }
  0x86   :  { %v90_v15 = vpop.f32.mrf.mxu0 }
  0x87   :  { %v91_v17 = vadd.f32 %v470_v16, %v90_v15 }
  0x89   :  { %v104_v21 = vmax.f32 %v91_v17, 0.0  ;;  %v487_v17 = vmov 32.0  }
  0x8a   :  { %474 = vrcp.f32 %v487_v17 }
  0x8e   :  { %v92_v18 = vpop.f32.mrf.mxu0 }
  0x8f   :  { %v93_v19 = vadd.f32 %v470_v16, %v92_v18 }
  0x90   :  { %v475_v18 = vpop.eup %474 }
  0x91   :  { %v105_v22 = vmax.f32 %v93_v19, 0.0  ;;  %v254_v19 = vmul.f32 32.0, %v475_v18  ;;  %vm258_vm2 = vweird.f32 %v475_v18 }
  0x93   :  { %v114_v23 = vpack.c.bf16 %v105_v22, %v104_v21  ;;  %v255_v20 = vsub.f32 1.0, %v254_v19 }
  0x95   :  { %189 = vmatmul.bf16.vlgmr.msra.gmra.mxu1 %v114_v23  ;;  %v256_v21 = vmul.f32 %v475_v18, %v255_v20 }
  0x96   :  { %v95_v24 = vpop.f32.mrf.mxu0 }
  0x97   :  { %v96_v25 = vadd.f32 %v470_v16, %v95_v24  ;;  %v257_v22 = vadd.f32 %v475_v18, %v256_v21 }
  0x99   :  { %v106_v28 = vmax.f32 %v96_v25, 0.0  ;;  %v601_v8 = vsel %vm258_vm2, %v475_v18, %v257_v22 }
  0x9e   :  { %v97_v26 = vpop.f32.mrf.mxu0 }
  0x9f   :  { %v98_v27 = vadd.f32 %v470_v16, %v97_v26 }
  0xa1   :  { %v107_v29 = vmax.f32 %v98_v27, 0.0 }
  0xa3   :  { %v115_v30 = vpack.c.bf16 %v107_v29, %v106_v28 }
  0xa5   :  { %194 = vmatmul.bf16.vlgmr.msra.gmra.mxu2 %v115_v30 }
  0xa6   :  { %v100_v31 = vpop.f32.mrf.mxu0 }
  0xa7   :  { %v101_v32 = vadd.f32 %v470_v16, %v100_v31 }
  0xa9   :  { %v108_v33 = vmax.f32 %v101_v32, 0.0 }
  0xab   :  { %v116_v34 = vpack.c.bf16 %v108_v33, %v108_v33 }
  0xad   :  { %199 = vmatmul.bf16.vlgmr.msra.gmra.mxu3 %v116_v34 }
  0xae   :  { %v102_v35 = vpop.f32.mrf.mxu0 }
 0x112   :  { %v190_v37 = vpop.f32.mrf.mxu1 }
 0x113   :  { %v204_v38 = vadd.f32 %v190_v37, %v109_v36 }
 0x115   :  { %209 = vst.msk [vmem:[#allocation2] sm:$0xff] %vm32_vm0, %v204_v38 }
 0x11a   :  { %v192_v42 = vpop.f32.mrf.mxu1 }
 0x11b   :  { %v205_v43 = vadd.f32 %v192_v42, %v110_v39 }
 0x11c   :  { %v214_v45 = vld [vmem:[#allocation2] sm:$0xff] }
 0x11d   :  { %210 = vst.msk [vmem:[#allocation2 + $0x8] sm:$0xff] %vm32_vm0, %v205_v43  ;;  %v223_v46 = vadd.f32 %v471_v41, %v214_v45 }
 0x11f   :  { %v233_v47 = vadd.f32 %v228_v44, %v223_v46 }
 0x121   :  { %v238_v48 = vsel %vm32_vm0, %v233_v47, 0.0 }
 0x122   :  { %239 = vadd.xlane.f32.xlu0 %v238_v48 }
 0x124   :  { %v215_v50 = vld [vmem:[#allocation2 + $0x8] sm:$0xff] }
 0x125   :  { %v224_v51 = vadd.f32 %v471_v41, %v215_v50 }
 0x127   :  { %v234_v53 = vadd.f32 %v229_v49, %v224_v51 }
 0x128   :  { %v195_v54 = vpop.f32.mrf.mxu2 }
 0x129   :  { %v206_v55 = vadd.f32 %v195_v54, %v111_v52  ;;  %v241_v56 = vsel %vm32_vm0, %v234_v53, 0.0 }
 0x12a   :  { %242 = vadd.xlane.f32.xlu0 %v241_v56 }
 0x12b   :  { %211 = vst.msk [vmem:[#allocation2 + $0x10] sm:$0xff] %vm32_vm0, %v206_v55 }
 0x130   :  { %v197_v60 = vpop.f32.mrf.mxu2  ;;  %v200_v61 = vpop.f32.mrf.mxu3 }
 0x131   :  { %v207_v62 = vadd.f32 %v197_v60, %v112_v57  ;;  %v208_v63 = vadd.f32 %v200_v61, %v113_v58 }
 0x132   :  { %v216_v1 = vld [vmem:[#allocation2 + $0x10] sm:$0xff] }
 0x133   :  { %212 = vst.msk [vmem:[#allocation2 + $0x18] sm:$0xff] %vm32_vm0, %v207_v62  ;;  %v225_v2 = vadd.f32 %v471_v41, %v216_v1  ;;  %v634_v62 = vld [vmem:[%s682_s5] ss:$0 sm:$0xff] }
 0x134   :  { %213 = vst.msk [vmem:[#allocation2 + $0x20] sm:$0x3] %vm37_vm1, %v208_v63 }
 0x135   :  { %v235_v3 = vadd.f32 %v230_v0, %v225_v2  ;;  %v639_v2 = vld [vmem:[%s683_s6] ss:$0 sm:$0xff] }
 0x137   :  { %v244_v4 = vsel %vm32_vm0, %v235_v3, 0.0 }
 0x138   :  { %v202_v5 = vpop.f32.mrf.mxu3  ;;  %245 = vadd.xlane.f32.xlu1 %v244_v4 }
 0x13a   :  { %v217_v9 = vld [vmem:[#allocation2 + $0x18] sm:$0xff] }
 0x13b   :  { %v218_v10 = vld [vmem:[#allocation2 + $0x20] sm:$0x3]  ;;  %v226_v11 = vadd.f32 %v471_v41, %v217_v9 }
 0x13c   :  { %v227_v12 = vadd.f32 %v471_v41, %v218_v10 }
 0x13d   :  { %v236_v13 = vadd.f32 %v231_v6, %v226_v11 }
 0x13e   :  { %v237_v14 = vadd.f32 %v232_v7, %v227_v12 }
 0x13f   :  { %v247_v15 = vsel %vm32_vm0, %v236_v13, 0.0 }
 0x140   :  { %v250_v16 = vsel %vm37_vm1, %v237_v14, 0.0  ;;  %248 = vadd.xlane.f32.xlu1 %v247_v15 }
 0x141   :  { %251 = vadd.xlane.f32.xlu2 %v250_v16 }
 0x195   :  { %v240_v23 = vpop.xlane.xlu0 %239 }
 0x196   :  { %v260_v24 = vmul.f32 %v601_v8, %v240_v23 }
 0x198   :  { %v265_v25 = vsub.f32 %v233_v47, %v260_v24 }
 0x19a   :  { %v270_v26 = vmul.f32 %v265_v25, %v265_v25 }
 0x19c   :  { %v275_v27 = vsel %vm32_vm0, %v270_v26, 0.0 }
 0x19d   :  { %276 = vadd.xlane.f32.xlu2 %v275_v27  ;;  %v243_v28 = vpop.xlane.xlu0 %242 }
 0x19e   :  { %v261_v29 = vmul.f32 %v601_v8, %v243_v28 }
 0x1a0   :  { %v606_v30 = vsub.f32 %v234_v53, %v261_v29 }
 0x1a2   :  { %v271_v31 = vmul.f32 %v606_v30, %v606_v30 }
 0x1a4   :  { %v278_v32 = vsel %vm32_vm0, %v271_v31, 0.0 }
 0x1a5   :  { %279 = vadd.xlane.f32.xlu0 %v278_v32 }
 0x1ab   :  { %v246_v33 = vpop.xlane.xlu1 %245 }
 0x1ac   :  { %v262_v34 = vmul.f32 %v601_v8, %v246_v33 }
 0x1ae   :  { %v612_v35 = vsub.f32 %v235_v3, %v262_v34 }
 0x1b0   :  { %v272_v36 = vmul.f32 %v612_v35, %v612_v35 }
 0x1b2   :  { %v281_v37 = vsel %vm32_vm0, %v272_v36, 0.0 }
 0x1b3   :  { %282 = vadd.xlane.f32.xlu1 %v281_v37  ;;  %v249_v38 = vpop.xlane.xlu1 %248 }
 0x1b4   :  { %v252_v39 = vpop.xlane.xlu2 %251  ;;  %v263_v40 = vmul.f32 %v601_v8, %v249_v38 }
 0x1b5   :  { %v264_v41 = vmul.f32 %v601_v8, %v252_v39 }
 0x1b6   :  { %v619_v42 = vsub.f32 %v236_v13, %v263_v40 }
 0x1b7   :  { %v621_v43 = vsub.f32 %v237_v14, %v264_v41 }
 0x1b8   :  { %v273_v44 = vmul.f32 %v619_v42, %v619_v42 }
 0x1b9   :  { %v274_v45 = vmul.f32 %v621_v43, %v621_v43 }
 0x1ba   :  { %v284_v46 = vsel %vm32_vm0, %v273_v44, 0.0 }
 0x1bb   :  { %285 = vadd.xlane.f32.xlu2 %v284_v46  ;;  %v287_v47 = vsel %vm37_vm1, %v274_v45, 0.0 }
 0x1bc   :  { %288 = vadd.xlane.f32.xlu0 %v287_v47 }
 0x210   :  { %v277_v48 = vpop.xlane.xlu2 %276 }
 0x211   :  { %v290_v49 = vmul.f32 %v277_v48, %v601_v8 }
 0x213   :  { %v295_v50 = vadd.f32 1e-05, %v290_v49 }
 0x215   :  { %476 = vrsqrt.f32 %v295_v50  ;;  %vm306_vm4 = vweird.f32 %v295_v50 }
 0x218   :  { %v280_v51 = vpop.xlane.xlu0 %279 }
 0x219   :  { %v291_v52 = vmul.f32 %v280_v51, %v601_v8 }
 0x21b   :  { %v477_v53 = vpop.eup %476  ;;  %v296_v54 = vadd.f32 1e-05, %v291_v52 }
 0x21c   :  { %v301_v55 = vmul.f32 %v477_v53, %v295_v50  ;;  %vm307_vm3 = vweird.f32 %v477_v53 }
 0x21d   :  { %478 = vrsqrt.f32 %v296_v54  ;;  %vm308_vm5 = vmor %vm306_vm4, %vm307_vm3  ;;  %vm316_vm8 = vweird.f32 %v296_v54  ;;  %vm383_vm3 = vcmask 253952  }
 0x21e   :  { %v302_v56 = vmul.f32 %v477_v53, %v301_v55 }
 0x220   :  { %v303_v57 = vmul.f32 0.5, %v302_v56 }
 0x222   :  { %v304_v58 = vsub.f32 1.5, %v303_v57 }
 0x223   :  { %v479_v59 = vpop.eup %478 }
 0x224   :  { %v305_v60 = vmul.f32 %v477_v53, %v304_v58  ;;  %v311_v61 = vmul.f32 %v479_v59, %v296_v54  ;;  %vm317_vm6 = vweird.f32 %v479_v59 }
 0x225   :  { %vm318_vm9 = vmor %vm316_vm8, %vm317_vm6 }
 0x226   :  { %v309_v63 = vsel %vm308_vm5, %v477_v53, %v305_v60  ;;  %v312_v0 = vmul.f32 %v479_v59, %v311_v61  ;;  %v283_v1 = vpop.xlane.xlu1 %282 }
 0x227   :  { %v350_v3 = vmul.f32 %v309_v63, %v265_v25  ;;  %v292_v4 = vmul.f32 %v283_v1, %v601_v8 }
 0x228   :  { %v313_v5 = vmul.f32 0.5, %v312_v0 }
 0x229   :  { %v359_v6 = vmul.f32 %v634_v62, %v350_v3  ;;  %v297_v7 = vadd.f32 1e-05, %v292_v4 }
 0x22a   :  { %v314_v9 = vsub.f32 1.5, %v313_v5 }
 0x22b   :  { %v368_v10 = vadd.f32 %v639_v2, %v359_v6  ;;  %480 = vrsqrt.f32 %v297_v7  ;;  %vm326_vm11 = vweird.f32 %v297_v7 }
 0x22c   :  { %v315_v11 = vmul.f32 %v479_v59, %v314_v9 }
 0x22d   :  { %v373_v12 = vpack.c.bf16 %v368_v10, %v368_v10 }
 0x22e   :  { %v319_v13 = vsel %vm318_vm9, %v479_v59, %v315_v11  ;;  %v286_v14 = vpop.xlane.xlu2 %285 }
 0x22f   :  { %379 = vst.msk [vmem:[%s684_s7] sm:$0xf] %vm378_vm7, %v373_v12  ;;  %v351_v15 = vmul.f32 %v319_v13, %v606_v30  ;;  %v293_v16 = vmul.f32 %v286_v14, %v601_v8  ;;  %v289_v17 = vpop.xlane.xlu0 %288 }
 0x230   :  { %v294_v18 = vmul.f32 %v289_v17, %v601_v8 }
 0x231   :  { %v481_v19 = vpop.eup %480  ;;  %v360_v20 = vmul.f32 %v634_v62, %v351_v15  ;;  %v298_v21 = vadd.f32 1e-05, %v293_v16 }
 0x232   :  { %v321_v22 = vmul.f32 %v481_v19, %v297_v7  ;;  %v299_v23 = vadd.f32 1e-05, %v294_v18  ;;  %vm327_vm10 = vweird.f32 %v481_v19 }
 0x233   :  { %v369_v24 = vadd.f32 %v639_v2, %v360_v20  ;;  %482 = vrsqrt.f32 %v298_v21  ;;  %vm328_vm12 = vmor %vm326_vm11, %vm327_vm10  ;;  %vm336_vm15 = vweird.f32 %v298_v21 }
 0x234   :  { %v322_v25 = vmul.f32 %v481_v19, %v321_v22  ;;  %484 = vrsqrt.f32 %v299_v23  ;;  %vm346_vm1 = vweird.f32 %v299_v23 }
 0x235   :  { %v374_v26 = vpack.c.bf16 %v369_v24, %v369_v24 }
 0x236   :  { %v323_v27 = vmul.f32 0.5, %v322_v25 }
 0x237   :  { %380 = vst.msk [vmem:[%s684_s7 + $0x4] sm:$0xf] %vm378_vm7, %v374_v26 }
 0x238   :  { %v324_v28 = vsub.f32 1.5, %v323_v27 }
 0x239   :  { %v483_v8 = vpop.eup %482 }
 0x23a   :  { %v485_v29 = vpop.eup %484  ;;  %v325_v30 = vmul.f32 %v481_v19, %v324_v28  ;;  %v331_v31 = vmul.f32 %v483_v8, %v298_v21  ;;  %vm337_vm13 = vweird.f32 %v483_v8 }
 0x23b   :  { %v341_v32 = vmul.f32 %v485_v29, %v299_v23  ;;  %vm347_vm14 = vweird.f32 %v485_v29  ;;  %vm338_vm0 = vmor %vm336_vm15, %vm337_vm13 }
 0x23c   :  { %v329_v33 = vsel %vm328_vm12, %v481_v19, %v325_v30  ;;  %v332_v34 = vmul.f32 %v483_v8, %v331_v31  ;;  %vm348_vm2 = vmor %vm346_vm1, %vm347_vm14 }
 0x23d   :  { %v352_v36 = vmul.f32 %v329_v33, %v612_v35  ;;  %v342_v37 = vmul.f32 %v485_v29, %v341_v32 }
 0x23e   :  { %v333_v38 = vmul.f32 0.5, %v332_v34 }
 0x23f   :  { %v361_v39 = vmul.f32 %v634_v62, %v352_v36  ;;  %v343_v40 = vmul.f32 0.5, %v342_v37 }
 0x240   :  { %v334_v41 = vsub.f32 1.5, %v333_v38 }
 0x241   :  { %v370_v44 = vadd.f32 %v639_v2, %v361_v39  ;;  %v344_v45 = vsub.f32 1.5, %v343_v40 }
 0x242   :  { %v335_v46 = vmul.f32 %v483_v8, %v334_v41 }
 0x243   :  { %v375_v47 = vpack.c.bf16 %v370_v44, %v370_v44  ;;  %v345_v48 = vmul.f32 %v485_v29, %v344_v45 }
 0x244   :  { %v339_v49 = vsel %vm338_vm0, %v483_v8, %v335_v46 }
 0x245   :  { %381 = vst.msk [vmem:[%s684_s7 + $0x8] sm:$0xf] %vm378_vm7, %v375_v47  ;;  %v353_v35 = vmul.f32 %v339_v49, %v619_v42  ;;  %v349_v50 = vsel %vm348_vm2, %v485_v29, %v345_v48 }
 0x246   :  { %v354_v51 = vmul.f32 %v349_v50, %v621_v43 }
 0x247   :  { %v362_v52 = vmul.f32 %v634_v62, %v353_v35 }
 0x248   :  { %v363_v53 = vmul.f32 %v634_v62, %v354_v51 }
 0x249   :  { %v371_v54 = vadd.f32 %v639_v2, %v362_v52 }
 0x24a   :  { %v372_v55 = vadd.f32 %v639_v2, %v363_v53 }
 0x24b   :  { %v376_v56 = vpack.c.bf16 %v371_v54, %v371_v54 }
 0x24c   :  { %v377_v57 = vpack.c.bf16 %v372_v55, %v372_v55 }
 0x24d   :  { %382 = vst.msk [vmem:[%s684_s7 + $0xc] sm:$0xf] %vm378_vm7, %v376_v56 }
 0x24e   :  { %384 = vst.msk [vmem:[%s684_s7 + $0x10] sm:$0x1] %vm383_vm3, %v377_v57 }

// kernel: vit_forward.20
= control target key start
LH: loop header
LB: loop body
LE: loop exit
PB: predicated region body
PF: predicated region fallthrough
CT: control target
= control target key end

     0   :  { %v132_v1 = vmov 0.0   ;;  %vm38_vm0 = vcmask 261120   ;;  %s168_s1 = inlined_call_operand.vmem [shape: bf16[32,128], index: 1, kind: input, shape index: {}]   ;;  %s169_s2 = inlined_call_operand.vmem [shape: f32[1,128], index: 2, kind: input, shape index: {}]   ;;  %s170_s0 = inlined_call_operand.vmem [shape: bf16[2,32], index: 0, kind: input, shape index: {}]   ;;  %s171_s3 = inlined_call_operand.vmem [shape: bf16[2,128], index: 3, kind: output, shape index: {}]  }
   0x1   :  { %v127_v0 = vld [vmem:[%s168_s1 + $0x8] sm:$0xff]  ;;  %19 = vst [vmem:[#allocation2] sm:$0x3] %v132_v1  ;;  %v126_v2 = vld [vmem:[%s168_s1] sm:$0xff] }
   0x2   :  { %48 = vmatpush.bf16.msra.mxu0 %v127_v0  ;;  %v21_v3 = vld [vmem:[%s170_s0] sm:$0x1] }
   0x3   :  { %v129_v7 = vld [vmem:[%s169_s2] ss:$0 sm:$0xff] }
   0x6   :  { %49 = vmatpush.bf16.msra.mxu0 %v126_v2 }
   0x8   :  { %v20_v4 = vld [vmem:[#allocation2] sm:$0x3] }
   0x9   :  { %124 = vmatmul.msk.bf16.vlgmr.msra.gmra.mxu0 %vm38_vm0, %v21_v3 }
  0x86   :  { %v51_v5 = vpop.f32.mrf.mxu0 }
  0x87   :  { %v55_v6 = vadd.f32 %v51_v5, %v20_v4 }
  0x89   :  { %56 = vst [vmem:[#allocation2] sm:$0x3] %v55_v6 }
  0x8e   :  { %v53_v8 = vpop.f32.mrf.mxu0 }
  0x90   :  { %v60_v9 = vld [vmem:[#allocation2] sm:$0x3] }
  0x91   :  { %v65_v10 = vadd.f32 %v129_v7, %v60_v9 }
  0x93   :  { %v67_v11 = vmul.f32 0.70710677, %v65_v10  ;;  %v66_v47 = vmul.f32 0.5, %v65_v10 }
  0x95   :  { %v68_v12 = vmul.f32 %v67_v11, %v67_v11 }
  0x97   :  { %v69_v13 = vmin.f32 %v68_v12, 16.0 }
  0x99   :  { %v70_v14 = vmul.f32 2.1237322e-06, %v69_v13  ;;  %v81_v15 = vmul.f32 3.8918573e-05, %v69_v13 }
  0x9b   :  { %v71_v16 = vadd.f32 0.00028619796, %v70_v14  ;;  %v82_v17 = vadd.f32 0.001143296, %v81_v15 }
  0x9d   :  { %v72_v18 = vmul.f32 %v71_v16, %v69_v13  ;;  %v83_v19 = vmul.f32 %v82_v17, %v69_v13 }
  0x9f   :  { %v84_v20 = vadd.f32 0.014752088, %v83_v19  ;;  %v73_v21 = vadd.f32 0.0036580483, %v72_v18 }
  0xa1   :  { %v85_v22 = vmul.f32 %v84_v20, %v69_v13  ;;  %v74_v24 = vmul.f32 %v73_v21, %v69_v13 }
  0xa3   :  { %v86_v23 = vadd.f32 0.112945676, %v85_v22  ;;  %v75_v27 = vadd.f32 0.05243302, %v74_v24 }
  0xa5   :  { %v87_v25 = vmul.f32 %v86_v23, %v69_v13  ;;  %v76_v30 = vmul.f32 %v75_v27, %v69_v13 }
  0xa7   :  { %v88_v26 = vadd.f32 0.4994258, %v87_v25  ;;  %v77_v31 = vadd.f32 0.18741608, %v76_v30 }
  0xa9   :  { %v89_v28 = vmul.f32 %v88_v26, %v69_v13  ;;  %v78_v33 = vmul.f32 %v77_v31, %v69_v13 }
  0xab   :  { %v90_v29 = vadd.f32 1.0, %v89_v28  ;;  %v79_v37 = vadd.f32 1.1283791, %v78_v33 }
  0xad   :  { %130 = vrcp.f32 %v90_v29  ;;  %v102_v36 = vand.u32 2147483648, %v90_v29  ;;  %v100_v39 = vand.u32 2147483647, %v90_v29  ;;  %vm96_vm2 = vweird.f32 %v90_v29 }
  0xae   :  { %v80_v42 = vmul.f32 %v79_v37, %v67_v11 }
  0xaf   :  { %v103_v41 = vor.u32 1.1754944e-38, %v102_v36  ;;  %vm101_vm4 = vcmp.eq.f32.partialorder %v100_v39, 8.507059e+37 }
  0xb3   :  { %v131_v32 = vpop.eup %130 }
  0xb4   :  { %v92_v34 = vmul.f32 %v131_v32, %v90_v29  ;;  %vm97_vm1 = vweird.f32 %v131_v32 }
  0xb5   :  { %vm98_vm3 = vmor %vm96_vm2, %vm97_vm1 }
  0xb6   :  { %v93_v35 = vsub.f32 1.0, %v92_v34 }
  0xb8   :  { %v94_v38 = vmul.f32 %v131_v32, %v93_v35 }
  0xba   :  { %v95_v40 = vadd.f32 %v131_v32, %v94_v38 }
  0xbc   :  { %v99_v43 = vsel %vm98_vm3, %v131_v32, %v95_v40 }
  0xbd   :  { %v104_v44 = vsel %vm101_vm4, %v103_v41, %v99_v43 }
  0xbe   :  { %v105_v45 = vmul.f32 %v104_v44, %v80_v42 }
  0xc0   :  { %v125_v46 = vclamps-f32 %v105_v45, 1.0 }
  0xc2   :  { %v108_v48 = vadd.f32 1.0, %v125_v46 }
  0xc4   :  { %v109_v49 = vmul.f32 %v108_v48, %v66_v47 }
  0xc6   :  { %v110_v50 = vpack.c.bf16 %v109_v49, %v109_v49 }
  0xc8   :  { %111 = vst [vmem:[%s171_s3] sm:$0x1] %v110_v50 }

// kernel: vit_forward.21
= control target key start
LH: loop header
LB: loop body
LE: loop exit
PB: predicated region body
PF: predicated region fallthrough
CT: control target
= control target key end

     0   :  { %v157_v2 = vmov 0.0   ;;  %s211_s1 = inlined_call_operand.vmem [shape: bf16[128,128], index: 1, kind: input, shape index: {}]   ;;  %s212_s2 = inlined_call_operand.vmem [shape: f32[1,128], index: 2, kind: input, shape index: {}]   ;;  %s213_s0 = inlined_call_operand.vmem [shape: bf16[2,128], index: 0, kind: input, shape index: {}]   ;;  %s214_s3 = inlined_call_operand.vmem [shape: bf16[2,128], index: 3, kind: output, shape index: {}]  }
   0x1   :  { %v154_v0 = vld [vmem:[%s211_s1 + $0x38] sm:$0xff]  ;;  %v153_v1 = vld [vmem:[%s211_s1 + $0x30] sm:$0xff]  ;;  %18 = vst [vmem:[#allocation2] sm:$0x3] %v157_v2  ;;  %v152_v3 = vld [vmem:[%s211_s1 + $0x28] sm:$0xff] }
   0x2   :  { %85 = vmatpush.bf16.msra.mxu0 %v154_v0  ;;  %v151_v4 = vld [vmem:[%s211_s1 + $0x20] sm:$0xff]  ;;  %v150_v5 = vld [vmem:[%s211_s1 + $0x18] sm:$0xff]  ;;  %v149_v6 = vld [vmem:[%s211_s1 + $0x10] sm:$0xff] }
   0x3   :  { %v148_v7 = vld [vmem:[%s211_s1 + $0x8] sm:$0xff]  ;;  %v147_v8 = vld [vmem:[%s211_s1] sm:$0xff] }
   0x4   :  { %v20_v9 = vld [vmem:[%s213_s0] sm:$0x1] }
   0x5   :  { %v156_v13 = vld [vmem:[%s212_s2] ss:$0 sm:$0xff] }
   0x6   :  { %86 = vmatpush.bf16.msra.mxu0 %v153_v1 }
   0x8   :  { %v19_v10 = vld [vmem:[#allocation2] sm:$0x3] }
   0xa   :  { %87 = vmatpush.bf16.msra.mxu0 %v152_v3 }
   0xe   :  { %88 = vmatpush.bf16.msra.mxu0 %v151_v4 }
  0x12   :  { %89 = vmatpush.bf16.msra.mxu0 %v150_v5 }
  0x16   :  { %90 = vmatpush.bf16.msra.mxu0 %v149_v6 }
  0x1a   :  { %91 = vmatpush.bf16.msra.mxu0 %v148_v7 }
  0x1e   :  { %92 = vmatpush.bf16.msra.mxu0 %v147_v8 }
  0x21   :  { %93 = vmatmul.bf16.vlgmr.msra.gmra.mxu0 %v20_v9 }
  0x9e   :  { %v94_v11 = vpop.f32.mrf.mxu0 }
  0x9f   :  { %v98_v12 = vadd.f32 %v94_v11, %v19_v10 }
  0xa1   :  { %99 = vst [vmem:[#allocation2] sm:$0x3] %v98_v12 }
  0xa6   :  { %v96_v14 = vpop.f32.mrf.mxu0 }
  0xa8   :  { %v103_v15 = vld [vmem:[#allocation2] sm:$0x3] }
  0xa9   :  { %v108_v16 = vadd.f32 %v156_v13, %v103_v15 }
  0xab   :  { %v109_v17 = vpack.c.bf16 %v108_v16, %v108_v16 }
  0xad   :  { %110 = vst [vmem:[%s214_s3] sm:$0x1] %v109_v17 }

</bundles_post_ra>
